<compile_context>
chip_gen: v6e
topology: v6e:2x2x1
jax: 0.10.0
libtpu: 0.0.40
codegen_flags: <defaults>
</compile_context>

<pallas_src>
import jax
import jax.numpy as jnp
from jax import lax
from jax.experimental import pallas as pl
from jax.experimental.pallas import tpu as pltpu

SEQ = 100             # Decoder.forward: x.unsqueeze(1).repeat(1, 100, 1)
HID = 64              # LSTM hidden size
LSTM_OUT = 2 * HID    # bidirectional -> 128 channels (= fused [fwd|rev] width)
OUT_CH = 2            # Conv1d out channels
INPUT_DIM = 32        # Decoder input_dim


def _sigmoid(x):
    # one EUP transcendental (tanh); no divide / reciprocal on the VALU
    return 0.5 * jnp.tanh(0.5 * x) + 0.5


def decoder_kernel(x_ref, wfc_ref, bfc_ref, wih_ref, bg_ref, whh_ref,
                   wcat_ref, bc_ref,
                   out_even_ref, out_odd_ref,
                   seq_ref, *stage_refs):
    B = x_ref.shape[0]
    GW = LSTM_OUT                      # 128 = per-gate fused width ([fwd | rev] on lanes)

    whh = whh_ref[...]                 # (128, 512) block-diagonal recurrent weights
    wcat = wcat_ref[...]               # (2, 384) = [W0 | W1 | W2] conv taps
    bc = bc_ref[...]                   # (2, 1)

    # ---- prologue: fc + LSTM input projection, all batch rows & both directions at once
    h_in = jnp.dot(x_ref[...], wfc_ref[...],
                   preferred_element_type=jnp.float32) + bfc_ref[...]          # (B, 64)
    # the LSTM input is identical at every timestep -> x-projection is loop invariant
    xproj = jnp.dot(h_in, wih_ref[...],
                    preferred_element_type=jnp.float32) + bg_ref[...]          # (B, 512)

    # ---- single fused recurrence: 100 steps, h/c carried in vregs -----------------------
    def step(t, carry):
        h, c = carry                                                           # (B, 128)
        gates = xproj + jnp.dot(h, whh, preferred_element_type=jnp.float32)    # (B, 512)
        sg = _sigmoid(gates[:, 0:3 * GW])        # [i | f | o] for both directions
        g = jnp.tanh(gates[:, 3 * GW:4 * GW])    # [g]
        i = sg[:, 0:GW]
        f = sg[:, GW:2 * GW]
        o = sg[:, 2 * GW:3 * GW]
        c_new = f * c + i * g
        h_new = o * jnp.tanh(c_new)
        # full-lane (128 wide) staging store per batch row; step-indexed
        for b in range(B):
            stage_refs[b][pl.ds(t, 1), :] = h_new[b:b + 1, :]
        return h_new, c_new

    zeros = jnp.zeros((B, GW), jnp.float32)
    lax.fori_loop(0, SEQ, step, (zeros, zeros))

    # ---- epilogue (tiny relative to the recurrence) --------------------------------------
    # anti-diagonal permutation: flips the step-indexed reverse direction to position order
    ri = lax.broadcasted_iota(jnp.int32, (SEQ, SEQ), 0)
    ci = lax.broadcasted_iota(jnp.int32, (SEQ, SEQ), 1)
    rev_p = jnp.where(ri + ci == SEQ - 1, 1.0, 0.0).astype(jnp.float32)

    row = lax.broadcasted_iota(jnp.int32, (SEQ, LSTM_OUT), 0)

    # zero only the two pad rows of the shift buffer, once (rows 1..SEQ are overwritten)
    zrow = jnp.zeros((1, LSTM_OUT), jnp.float32)
    seq_ref[0:1, :] = zrow
    seq_ref[SEQ + 1:SEQ + 2, :] = zrow

    def cmat(w, a):   # (2, K) x (SEQ, K) -> (2, SEQ): time lands lane-dense
        return lax.dot_general(w, a, (((1,), (1,)), ((), ())),
                               preferred_element_type=jnp.float32)

    for b in range(B):
        fwd = stage_refs[b][:, 0:HID]                    # (100, 64), position-indexed
        bwd = stage_refs[b][:, HID:LSTM_OUT]             # (100, 64), step-indexed
        rev = jnp.dot(rev_p, bwd, preferred_element_type=jnp.float32)  # time flip (MXU)
        seq_ref[1:SEQ + 1, 0:HID] = fwd
        seq_ref[1:SEQ + 1, HID:LSTM_OUT] = rev

        seq = seq_ref[1:SEQ + 1, :]      # s[m]
        s_m1z = seq_ref[0:SEQ, :]        # s[m-1] (pad row at m=0)
        s_p1z = seq_ref[2:SEQ + 2, :]    # s[m+1] (pad row at m=SEQ-1)

        # Upsample(scale=2, linear, align_corners=False):
        #   up[2m]   = 0.25*s[m-1] + 0.75*s[m]   (edge clamp: up[0]   = s[0])
        #   up[2m+1] = 0.75*s[m]   + 0.25*s[m+1] (edge clamp: up[199] = s[99])
        s_prev = jnp.where(row == 0, seq, s_m1z)
        s_next = jnp.where(row == SEQ - 1, seq, s_p1z)
        even = 0.25 * s_prev + 0.75 * seq                                       # up[2m]
        odd = 0.75 * seq + 0.25 * s_next                                        # up[2m+1]
        odd_prev = jnp.where(row == 0, 0.0, 0.75 * s_m1z + 0.25 * seq)          # up[2m-1] (conv zero pad)
        even_next = jnp.where(row == SEQ - 1, 0.0, 0.25 * seq + 0.75 * s_p1z)   # up[2m+2] (conv zero pad)

        # Conv1d(k=3, pad=1): y[j] = W0·up[j-1] + W1·up[j] + W2·up[j+1] + b
        a_even = jnp.concatenate([odd_prev, even, odd], axis=1)     # (100, 384)
        a_odd = jnp.concatenate([even, odd, even_next], axis=1)     # (100, 384)
        out_even_ref[b, :, :] = cmat(wcat, a_even) + bc             # y[2m]   -> (2, 100)
        out_odd_ref[b, :, :] = cmat(wcat, a_odd) + bc               # y[2m+1] -> (2, 100)


@jax.jit
def decoder_forward(x, params):
    wfc, bfc, wih, bg, whh, wcat, bc = params
    B = x.shape[0]
    out_even, out_odd = pl.pallas_call(
        decoder_kernel,
        out_shape=(
            jax.ShapeDtypeStruct((B, OUT_CH, SEQ), jnp.float32),
            jax.ShapeDtypeStruct((B, OUT_CH, SEQ), jnp.float32),
        ),
        in_specs=[pl.BlockSpec(memory_space=pltpu.MemorySpace.VMEM)] * 8,
        out_specs=(
            pl.BlockSpec(memory_space=pltpu.MemorySpace.VMEM),
            pl.BlockSpec(memory_space=pltpu.MemorySpace.VMEM),
        ),
        scratch_shapes=(
            [pltpu.VMEM((SEQ + 2, LSTM_OUT), jnp.float32)]                      # padded shift buffer
            + [pltpu.VMEM((SEQ, LSTM_OUT), jnp.float32) for _ in range(B)]      # per-batch staging
        ),
    )(x, wfc, bfc, wih, bg, whh, wcat, bc)
    # interleave even/odd time positions -> (B, 2, 200), matching the PyTorch NCL output
    return jnp.stack([out_even, out_odd], axis=-1).reshape(B, OUT_CH, 2 * SEQ)


def pack_params(fc_w, fc_b, w_ih_f, w_hh_f, b_ih_f, b_hh_f,
                w_ih_r, w_hh_r, b_ih_r, b_hh_r, conv_w, conv_b):
    """PyTorch-layout parameters -> fused, kernel-friendly (right-multiply) layouts."""
    gate_order = (0, 1, 3, 2)   # PyTorch gate rows are [i, f, g, o]; fuse as [i, f, o | g]

    def gblk(w, k):             # (4H, K) -> (K, H) transposed slice for gate k
        return w[k * HID:(k + 1) * HID, :].T

    def bblk(bvec, k):
        return bvec[k * HID:(k + 1) * HID]

    # fused input projection: columns [i_f,i_r, f_f,f_r, o_f,o_r, g_f,g_r] -> (64, 512)
    wih = jnp.concatenate([gblk(w, k) for k in gate_order for w in (w_ih_f, w_ih_r)], axis=1)
    b_f = b_ih_f + b_hh_f
    b_r = b_ih_r + b_hh_r
    bg = jnp.concatenate([bblk(bv, k) for k in gate_order for bv in (b_f, b_r)])[None, :]  # (1, 512)

    # block-diagonal recurrent weights: rows [h_fwd(0:64) | h_rev(64:128)] -> (128, 512)
    z = jnp.zeros((HID, HID), jnp.float32)
    top = jnp.concatenate([m for k in gate_order for m in (gblk(w_hh_f, k), z)], axis=1)
    bot = jnp.concatenate([m for k in gate_order for m in (z, gblk(w_hh_r, k))], axis=1)
    whh = jnp.concatenate([top, bot], axis=0)

    # conv taps concatenated along the contraction dim: (2, 3*128)
    wcat = jnp.concatenate([conv_w[:, :, 0], conv_w[:, :, 1], conv_w[:, :, 2]], axis=1)
    bc = conv_b[:, None]        # (2, 1)

    return (fc_w.T, fc_b[None, :], wih, bg, whh, wcat, bc)


def init_params(key, input_dim=INPUT_DIM):
    ks = jax.random.split(key, 12)
    s = 0.1
    # PyTorch parameter shapes, filled deterministically
    fc_w = jax.random.normal(ks[0], (HID, input_dim), jnp.float32) * s        # Linear.weight (out, in)
    fc_b = jax.random.normal(ks[1], (HID,), jnp.float32) * s
    w_ih_f = jax.random.normal(ks[2], (4 * HID, HID), jnp.float32) * s        # gate rows i,f,g,o
    w_hh_f = jax.random.normal(ks[3], (4 * HID, HID), jnp.float32) * s
    b_ih_f = jax.random.normal(ks[4], (4 * HID,), jnp.float32) * s
    b_hh_f = jax.random.normal(ks[5], (4 * HID,), jnp.float32) * s
    w_ih_r = jax.random.normal(ks[6], (4 * HID, HID), jnp.float32) * s
    w_hh_r = jax.random.normal(ks[7], (4 * HID, HID), jnp.float32) * s
    b_ih_r = jax.random.normal(ks[8], (4 * HID,), jnp.float32) * s
    b_hh_r = jax.random.normal(ks[9], (4 * HID,), jnp.float32) * s
    conv_w = jax.random.normal(ks[10], (OUT_CH, LSTM_OUT, 3), jnp.float32) * s  # Conv1d.weight (co, ci, k)
    conv_b = jax.random.normal(ks[11], (OUT_CH,), jnp.float32) * s
    return pack_params(fc_w, fc_b, w_ih_f, w_hh_f, b_ih_f, b_hh_f,
                       w_ih_r, w_hh_r, b_ih_r, b_hh_r, conv_w, conv_b)


if __name__ == "__main__":
    key = jax.random.PRNGKey(0)
    kx, kp = jax.random.split(key)
    params = init_params(kp)
    x = jax.random.normal(kx, (2, INPUT_DIM), jnp.float32)    # (batch, input_dim)
    y = decoder_forward(x, params)
    y = jax.block_until_ready(y)
    assert y.shape == (2, OUT_CH, 2 * SEQ), y.shape           # matches PyTorch (B, 2, 200)
    assert bool(jnp.all(jnp.isfinite(y)))
    print("KERNEL_OK")
</pallas_src>

<mosaic_0001>
module attributes {stable_mosaic.version = 11 : i64} {
  func.func @decoder_kernel(%arg0: memref<2x32xf32, #tpu.memory_space<vmem>>, %arg1: memref<32x64xf32, #tpu.memory_space<vmem>>, %arg2: memref<1x64xf32, #tpu.memory_space<vmem>>, %arg3: memref<64x512xf32, #tpu.memory_space<vmem>>, %arg4: memref<1x512xf32, #tpu.memory_space<vmem>>, %arg5: memref<128x512xf32, #tpu.memory_space<vmem>>, %arg6: memref<2x384xf32, #tpu.memory_space<vmem>>, %arg7: memref<2x1xf32, #tpu.memory_space<vmem>>, %arg8: memref<2x2x100xf32, #tpu.memory_space<vmem>>, %arg9: memref<2x2x100xf32, #tpu.memory_space<vmem>>, %arg10: memref<102x128xf32, #tpu.memory_space<vmem>>, %arg11: memref<100x128xf32, #tpu.memory_space<vmem>>, %arg12: memref<100x128xf32, #tpu.memory_space<vmem>>) attributes {dimension_semantics = [], scalar_prefetch = 0 : i64, scratch_operands = 3 : i64, tpu.core_type = #tpu.core_type<tc>} {
    %c0 = arith.constant 0 : index
    %c0_0 = arith.constant 0 : index
    %0 = vector.load %arg5[%c0, %c0_0] : memref<128x512xf32, #tpu.memory_space<vmem>>, vector<128x512xf32>
    %c0_1 = arith.constant 0 : index
    %c0_2 = arith.constant 0 : index
    %1 = vector.load %arg6[%c0_1, %c0_2] : memref<2x384xf32, #tpu.memory_space<vmem>>, vector<2x384xf32>
    %c0_3 = arith.constant 0 : index
    %c0_4 = arith.constant 0 : index
    %2 = vector.load %arg7[%c0_3, %c0_4] : memref<2x1xf32, #tpu.memory_space<vmem>>, vector<2x1xf32>
    %c0_5 = arith.constant 0 : index
    %c0_6 = arith.constant 0 : index
    %3 = vector.load %arg0[%c0_5, %c0_6] : memref<2x32xf32, #tpu.memory_space<vmem>>, vector<2x32xf32>
    %c0_7 = arith.constant 0 : index
    %c0_8 = arith.constant 0 : index
    %4 = vector.load %arg1[%c0_7, %c0_8] : memref<32x64xf32, #tpu.memory_space<vmem>>, vector<32x64xf32>
    %cst = arith.constant dense<0.000000e+00> : vector<2x64xf32>
    %5 = tpu.matmul %3, %4, %cst {dimension_numbers = #tpu.dot_dimension_numbers<[1], [0], [0], [1], [0, 0, 1, 1], [], []>} : vector<2x32xf32>, vector<32x64xf32>, vector<2x64xf32> -> vector<2x64xf32>
    %c0_9 = arith.constant 0 : index
    %c0_10 = arith.constant 0 : index
    %6 = vector.load %arg2[%c0_9, %c0_10] : memref<1x64xf32, #tpu.memory_space<vmem>>, vector<1x64xf32>
    %7 = vector.broadcast %6 : vector<1x64xf32> to vector<2x64xf32>
    %8 = arith.addf %5, %7 : vector<2x64xf32>
    %c0_11 = arith.constant 0 : index
    %c0_12 = arith.constant 0 : index
    %9 = vector.load %arg3[%c0_11, %c0_12] : memref<64x512xf32, #tpu.memory_space<vmem>>, vector<64x512xf32>
    %cst_13 = arith.constant dense<0.000000e+00> : vector<2x512xf32>
    %10 = tpu.matmul %8, %9, %cst_13 {dimension_numbers = #tpu.dot_dimension_numbers<[1], [0], [0], [1], [0, 0, 1, 1], [], []>} : vector<2x64xf32>, vector<64x512xf32>, vector<2x512xf32> -> vector<2x512xf32>
    %c0_14 = arith.constant 0 : index
    %c0_15 = arith.constant 0 : index
    %11 = vector.load %arg4[%c0_14, %c0_15] : memref<1x512xf32, #tpu.memory_space<vmem>>, vector<1x512xf32>
    %12 = vector.broadcast %11 : vector<1x512xf32> to vector<2x512xf32>
    %13 = arith.addf %10, %12 : vector<2x512xf32>
    %cst_16 = arith.constant 0.000000e+00 : f32
    %14 = vector.broadcast %cst_16 : f32 to vector<2x128xf32>
    %c0_i32 = arith.constant 0 : i32
    %c100_i32 = arith.constant 100 : i32
    %15 = arith.addi %c0_i32, %c100_i32 : i32
    %c1_i32 = arith.constant 1 : i32
    %16:2 = scf.for %arg13 = %c0_i32 to %15 step %c1_i32 iter_args(%arg14 = %14, %arg15 = %14) -> (vector<2x128xf32>, vector<2x128xf32>)  : i32 {
      %cst_95 = arith.constant dense<0.000000e+00> : vector<2x512xf32>
      %141 = tpu.matmul %arg14, %0, %cst_95 {dimension_numbers = #tpu.dot_dimension_numbers<[1], [0], [0], [1], [0, 0, 1, 1], [], []>} : vector<2x128xf32>, vector<128x512xf32>, vector<2x512xf32> -> vector<2x512xf32>
      %142 = arith.addf %13, %141 : vector<2x512xf32>
      %143 = vector.extract_strided_slice %142 {offsets = [0, 0], sizes = [2, 384], strides = [1, 1]} : vector<2x512xf32> to vector<2x384xf32>
      %cst_96 = arith.constant 5.000000e-01 : f32
      %144 = vector.broadcast %cst_96 : f32 to vector<2x384xf32>
      %145 = arith.mulf %144, %143 : vector<2x384xf32>
      %146 = math.tanh %145 : vector<2x384xf32>
      %cst_97 = arith.constant 5.000000e-01 : f32
      %147 = vector.broadcast %cst_97 : f32 to vector<2x384xf32>
      %148 = arith.mulf %147, %146 : vector<2x384xf32>
      %cst_98 = arith.constant 5.000000e-01 : f32
      %149 = vector.broadcast %cst_98 : f32 to vector<2x384xf32>
      %150 = arith.addf %148, %149 : vector<2x384xf32>
      %151 = vector.extract_strided_slice %142 {offsets = [0, 384], sizes = [2, 128], strides = [1, 1]} : vector<2x512xf32> to vector<2x128xf32>
      %152 = math.tanh %151 : vector<2x128xf32>
      %153 = vector.extract_strided_slice %150 {offsets = [0, 0], sizes = [2, 128], strides = [1, 1]} : vector<2x384xf32> to vector<2x128xf32>
      %154 = vector.extract_strided_slice %150 {offsets = [0, 128], sizes = [2, 128], strides = [1, 1]} : vector<2x384xf32> to vector<2x128xf32>
      %155 = vector.extract_strided_slice %150 {offsets = [0, 256], sizes = [2, 128], strides = [1, 1]} : vector<2x384xf32> to vector<2x128xf32>
      %156 = arith.mulf %154, %arg15 : vector<2x128xf32>
      %157 = arith.mulf %153, %152 : vector<2x128xf32>
      %158 = arith.addf %156, %157 : vector<2x128xf32>
      %159 = math.tanh %158 : vector<2x128xf32>
      %160 = arith.mulf %155, %159 : vector<2x128xf32>
      %161 = vector.extract_strided_slice %160 {offsets = [0, 0], sizes = [1, 128], strides = [1, 1]} : vector<2x128xf32> to vector<1x128xf32>
      %162 = arith.index_cast %arg13 : i32 to index
      %c0_99 = arith.constant 0 : index
      %163 = vector.load %arg11[%162, %c0_99] : memref<100x128xf32, #tpu.memory_space<vmem>>, vector<1x128xf32>
      tpu.vector_store %arg11[%162, %c0_99], %161 {strides = array<i32>} : memref<100x128xf32, #tpu.memory_space<vmem>>, vector<1x128xf32>,
      %164 = vector.extract_strided_slice %160 {offsets = [1, 0], sizes = [1, 128], strides = [1, 1]} : vector<2x128xf32> to vector<1x128xf32>
      %165 = arith.index_cast %arg13 : i32 to index
      %c0_100 = arith.constant 0 : index
      %166 = vector.load %arg12[%165, %c0_100] : memref<100x128xf32, #tpu.memory_space<vmem>>, vector<1x128xf32>
      tpu.vector_store %arg12[%165, %c0_100], %164 {strides = array<i32>} : memref<100x128xf32, #tpu.memory_space<vmem>>, vector<1x128xf32>,
      scf.yield %160, %158 : vector<2x128xf32>, vector<2x128xf32>
    }
    %c100_i32_17 = arith.constant 100 : i32
    %17 = tpu.iota {dimensions = array<i32: 0>} : vector<100x100xi32>
    %18 = tpu.iota {dimensions = array<i32: 1>} : vector<100x100xi32>
    %19 = arith.addi %17, %18 : vector<100x100xi32>
    %c99_i32 = arith.constant 99 : i32
    %20 = vector.broadcast %c99_i32 : i32 to vector<100x100xi32>
    %21 = arith.cmpi eq, %19, %20 : vector<100x100xi32>
    %cst_18 = arith.constant 1.000000e+00 : f32
    %cst_19 = arith.constant 0.000000e+00 : f32
    %22 = vector.broadcast %cst_18 : f32 to vector<100x100xf32>
    %23 = vector.broadcast %cst_19 : f32 to vector<100x100xf32>
    %24 = arith.select %21, %22, %23 : vector<100x100xi1>, vector<100x100xf32>
    %25 = tpu.iota {dimensions = array<i32: 0>} : vector<100x128xi32>
    %cst_20 = arith.constant 0.000000e+00 : f32
    %26 = vector.broadcast %cst_20 : f32 to vector<1x128xf32>
    %c0_21 = arith.constant 0 : index
    %c0_22 = arith.constant 0 : index
    %27 = vector.load %arg10[%c0_21, %c0_22] : memref<102x128xf32, #tpu.memory_space<vmem>>, vector<1x128xf32>
    tpu.vector_store %arg10[%c0_21, %c0_22], %26 {strides = array<i32>} : memref<102x128xf32, #tpu.memory_space<vmem>>, vector<1x128xf32>,
    %c101 = arith.constant 101 : index
    %c0_23 = arith.constant 0 : index
    %28 = vector.load %arg10[%c101, %c0_23] : memref<102x128xf32, #tpu.memory_space<vmem>>, vector<1x128xf32>
    tpu.vector_store %arg10[%c101, %c0_23], %26 {strides = array<i32>} : memref<102x128xf32, #tpu.memory_space<vmem>>, vector<1x128xf32>,
    %c0_24 = arith.constant 0 : index
    %c0_25 = arith.constant 0 : index
    %29 = vector.load %arg11[%c0_24, %c0_25] : memref<100x128xf32, #tpu.memory_space<vmem>>, vector<100x64xf32>
    %c0_26 = arith.constant 0 : index
    %c64 = arith.constant 64 : index
    %30 = vector.load %arg11[%c0_26, %c64] : memref<100x128xf32, #tpu.memory_space<vmem>>, vector<100x64xf32>
    %cst_27 = arith.constant dense<0.000000e+00> : vector<100x64xf32>
    %31 = tpu.matmul %24, %30, %cst_27 {dimension_numbers = #tpu.dot_dimension_numbers<[1], [0], [0], [1], [0, 0, 1, 1], [], []>} : vector<100x100xf32>, vector<100x64xf32>, vector<100x64xf32> -> vector<100x64xf32>
    %c1 = arith.constant 1 : index
    %c0_28 = arith.constant 0 : index
    %32 = vector.load %arg10[%c1, %c0_28] : memref<102x128xf32, #tpu.memory_space<vmem>>, vector<100x64xf32>
    tpu.vector_store %arg10[%c1, %c0_28], %29 {strides = array<i32>} : memref<102x128xf32, #tpu.memory_space<vmem>>, vector<100x64xf32>,
    %c1_29 = arith.constant 1 : index
    %c64_30 = arith.constant 64 : index
    %33 = vector.load %arg10[%c1_29, %c64_30] : memref<102x128xf32, #tpu.memory_space<vmem>>, vector<100x64xf32>
    tpu.vector_store %arg10[%c1_29, %c64_30], %31 {strides = array<i32>} : memref<102x128xf32, #tpu.memory_space<vmem>>, vector<100x64xf32>,
    %c1_31 = arith.constant 1 : index
    %c0_32 = arith.constant 0 : index
    %34 = vector.load %arg10[%c1_31, %c0_32] : memref<102x128xf32, #tpu.memory_space<vmem>>, vector<100x128xf32>
    %c0_33 = arith.constant 0 : index
    %c0_34 = arith.constant 0 : index
    %35 = vector.load %arg10[%c0_33, %c0_34] : memref<102x128xf32, #tpu.memory_space<vmem>>, vector<100x128xf32>
    %c2 = arith.constant 2 : index
    %c0_35 = arith.constant 0 : index
    %36 = vector.load %arg10[%c2, %c0_35] : memref<102x128xf32, #tpu.memory_space<vmem>>, vector<100x128xf32>
    %c0_i32_36 = arith.constant 0 : i32
    %37 = vector.broadcast %c0_i32_36 : i32 to vector<100x128xi32>
    %38 = arith.cmpi eq, %25, %37 : vector<100x128xi32>
    %39 = arith.select %38, %34, %35 : vector<100x128xi1>, vector<100x128xf32>
    %c99_i32_37 = arith.constant 99 : i32
    %40 = vector.broadcast %c99_i32_37 : i32 to vector<100x128xi32>
    %41 = arith.cmpi eq, %25, %40 : vector<100x128xi32>
    %42 = arith.select %41, %34, %36 : vector<100x128xi1>, vector<100x128xf32>
    %cst_38 = arith.constant 2.500000e-01 : f32
    %43 = vector.broadcast %cst_38 : f32 to vector<100x128xf32>
    %44 = arith.mulf %43, %39 : vector<100x128xf32>
    %cst_39 = arith.constant 7.500000e-01 : f32
    %45 = vector.broadcast %cst_39 : f32 to vector<100x128xf32>
    %46 = arith.mulf %45, %34 : vector<100x128xf32>
    %47 = arith.addf %44, %46 : vector<100x128xf32>
    %cst_40 = arith.constant 7.500000e-01 : f32
    %48 = vector.broadcast %cst_40 : f32 to vector<100x128xf32>
    %49 = arith.mulf %48, %34 : vector<100x128xf32>
    %cst_41 = arith.constant 2.500000e-01 : f32
    %50 = vector.broadcast %cst_41 : f32 to vector<100x128xf32>
    %51 = arith.mulf %50, %42 : vector<100x128xf32>
    %52 = arith.addf %49, %51 : vector<100x128xf32>
    %c0_i32_42 = arith.constant 0 : i32
    %53 = vector.broadcast %c0_i32_42 : i32 to vector<100x128xi32>
    %54 = arith.cmpi eq, %25, %53 : vector<100x128xi32>
    %cst_43 = arith.constant 7.500000e-01 : f32
    %55 = vector.broadcast %cst_43 : f32 to vector<100x128xf32>
    %56 = arith.mulf %55, %35 : vector<100x128xf32>
    %cst_44 = arith.constant 2.500000e-01 : f32
    %57 = vector.broadcast %cst_44 : f32 to vector<100x128xf32>
    %58 = arith.mulf %57, %34 : vector<100x128xf32>
    %59 = arith.addf %56, %58 : vector<100x128xf32>
    %cst_45 = arith.constant 0.000000e+00 : f32
    %60 = vector.broadcast %cst_45 : f32 to vector<100x128xf32>
    %61 = arith.select %54, %60, %59 : vector<100x128xi1>, vector<100x128xf32>
    %c99_i32_46 = arith.constant 99 : i32
    %62 = vector.broadcast %c99_i32_46 : i32 to vector<100x128xi32>
    %63 = arith.cmpi eq, %25, %62 : vector<100x128xi32>
    %cst_47 = arith.constant 2.500000e-01 : f32
    %64 = vector.broadcast %cst_47 : f32 to vector<100x128xf32>
    %65 = arith.mulf %64, %34 : vector<100x128xf32>
    %cst_48 = arith.constant 7.500000e-01 : f32
    %66 = vector.broadcast %cst_48 : f32 to vector<100x128xf32>
    %67 = arith.mulf %66, %36 : vector<100x128xf32>
    %68 = arith.addf %65, %67 : vector<100x128xf32>
    %cst_49 = arith.constant 0.000000e+00 : f32
    %69 = vector.broadcast %cst_49 : f32 to vector<100x128xf32>
    %70 = arith.select %63, %69, %68 : vector<100x128xi1>, vector<100x128xf32>
    %71 = tpu.concatenate %61, %47, %52 in 1 : vector<100x128xf32>, vector<100x128xf32>, vector<100x128xf32> -> vector<100x384xf32>
    %72 = tpu.concatenate %47, %52, %70 in 1 : vector<100x128xf32>, vector<100x128xf32>, vector<100x128xf32> -> vector<100x384xf32>
    %cst_50 = arith.constant dense<0.000000e+00> : vector<2x100xf32>
    %73 = tpu.matmul %1, %71, %cst_50 {dimension_numbers = #tpu.dot_dimension_numbers<[1], [1], [0], [0], [0, 0, 1, 0], [], []>} : vector<2x384xf32>, vector<100x384xf32>, vector<2x100xf32> -> vector<2x100xf32>
    %74 = vector.broadcast %2 : vector<2x1xf32> to vector<2x100xf32>
    %75 = arith.addf %73, %74 : vector<2x100xf32>
    %c0_51 = arith.constant 0 : index
    %c0_52 = arith.constant 0 : index
    %c0_53 = arith.constant 0 : index
    %76 = vector.load %arg8[%c0_51, %c0_52, %c0_53] : memref<2x2x100xf32, #tpu.memory_space<vmem>>, vector<1x2x100xf32>
    %77 = vector.shape_cast %76 : vector<1x2x100xf32> to vector<2x100xf32>
    %78 = vector.shape_cast %75 : vector<2x100xf32> to vector<1x2x100xf32>
    tpu.vector_store %arg8[%c0_51, %c0_52, %c0_53], %78 {strides = array<i32>} : memref<2x2x100xf32, #tpu.memory_space<vmem>>, vector<1x2x100xf32>,
    %cst_54 = arith.constant dense<0.000000e+00> : vector<2x100xf32>
    %79 = tpu.matmul %1, %72, %cst_54 {dimension_numbers = #tpu.dot_dimension_numbers<[1], [1], [0], [0], [0, 0, 1, 0], [], []>} : vector<2x384xf32>, vector<100x384xf32>, vector<2x100xf32> -> vector<2x100xf32>
    %80 = vector.broadcast %2 : vector<2x1xf32> to vector<2x100xf32>
    %81 = arith.addf %79, %80 : vector<2x100xf32>
    %c0_55 = arith.constant 0 : index
    %c0_56 = arith.constant 0 : index
    %c0_57 = arith.constant 0 : index
    %82 = vector.load %arg9[%c0_55, %c0_56, %c0_57] : memref<2x2x100xf32, #tpu.memory_space<vmem>>, vector<1x2x100xf32>
    %83 = vector.shape_cast %82 : vector<1x2x100xf32> to vector<2x100xf32>
    %84 = vector.shape_cast %81 : vector<2x100xf32> to vector<1x2x100xf32>
    tpu.vector_store %arg9[%c0_55, %c0_56, %c0_57], %84 {strides = array<i32>} : memref<2x2x100xf32, #tpu.memory_space<vmem>>, vector<1x2x100xf32>,
    %c0_58 = arith.constant 0 : index
    %c0_59 = arith.constant 0 : index
    %85 = vector.load %arg12[%c0_58, %c0_59] : memref<100x128xf32, #tpu.memory_space<vmem>>, vector<100x64xf32>
    %c0_60 = arith.constant 0 : index
    %c64_61 = arith.constant 64 : index
    %86 = vector.load %arg12[%c0_60, %c64_61] : memref<100x128xf32, #tpu.memory_space<vmem>>, vector<100x64xf32>
    %cst_62 = arith.constant dense<0.000000e+00> : vector<100x64xf32>
    %87 = tpu.matmul %24, %86, %cst_62 {dimension_numbers = #tpu.dot_dimension_numbers<[1], [0], [0], [1], [0, 0, 1, 1], [], []>} : vector<100x100xf32>, vector<100x64xf32>, vector<100x64xf32> -> vector<100x64xf32>
    %c1_63 = arith.constant 1 : index
    %c0_64 = arith.constant 0 : index
    %88 = vector.load %arg10[%c1_63, %c0_64] : memref<102x128xf32, #tpu.memory_space<vmem>>, vector<100x64xf32>
    tpu.vector_store %arg10[%c1_63, %c0_64], %85 {strides = array<i32>} : memref<102x128xf32, #tpu.memory_space<vmem>>, vector<100x64xf32>,
    %c1_65 = arith.constant 1 : index
    %c64_66 = arith.constant 64 : index
    %89 = vector.load %arg10[%c1_65, %c64_66] : memref<102x128xf32, #tpu.memory_space<vmem>>, vector<100x64xf32>
    tpu.vector_store %arg10[%c1_65, %c64_66], %87 {strides = array<i32>} : memref<102x128xf32, #tpu.memory_space<vmem>>, vector<100x64xf32>,
    %c1_67 = arith.constant 1 : index
    %c0_68 = arith.constant 0 : index
    %90 = vector.load %arg10[%c1_67, %c0_68] : memref<102x128xf32, #tpu.memory_space<vmem>>, vector<100x128xf32>
    %c0_69 = arith.constant 0 : index
    %c0_70 = arith.constant 0 : index
    %91 = vector.load %arg10[%c0_69, %c0_70] : memref<102x128xf32, #tpu.memory_space<vmem>>, vector<100x128xf32>
    %c2_71 = arith.constant 2 : index
    %c0_72 = arith.constant 0 : index
    %92 = vector.load %arg10[%c2_71, %c0_72] : memref<102x128xf32, #tpu.memory_space<vmem>>, vector<100x128xf32>
    %c0_i32_73 = arith.constant 0 : i32
    %93 = vector.broadcast %c0_i32_73 : i32 to vector<100x128xi32>
    %94 = arith.cmpi eq, %25, %93 : vector<100x128xi32>
    %95 = arith.select %94, %90, %91 : vector<100x128xi1>, vector<100x128xf32>
    %c99_i32_74 = arith.constant 99 : i32
    %96 = vector.broadcast %c99_i32_74 : i32 to vector<100x128xi32>
    %97 = arith.cmpi eq, %25, %96 : vector<100x128xi32>
    %98 = arith.select %97, %90, %92 : vector<100x128xi1>, vector<100x128xf32>
    %cst_75 = arith.constant 2.500000e-01 : f32
    %99 = vector.broadcast %cst_75 : f32 to vector<100x128xf32>
    %100 = arith.mulf %99, %95 : vector<100x128xf32>
    %cst_76 = arith.constant 7.500000e-01 : f32
    %101 = vector.broadcast %cst_76 : f32 to vector<100x128xf32>
    %102 = arith.mulf %101, %90 : vector<100x128xf32>
    %103 = arith.addf %100, %102 : vector<100x128xf32>
    %cst_77 = arith.constant 7.500000e-01 : f32
    %104 = vector.broadcast %cst_77 : f32 to vector<100x128xf32>
    %105 = arith.mulf %104, %90 : vector<100x128xf32>
    %cst_78 = arith.constant 2.500000e-01 : f32
    %106 = vector.broadcast %cst_78 : f32 to vector<100x128xf32>
    %107 = arith.mulf %106, %98 : vector<100x128xf32>
    %108 = arith.addf %105, %107 : vector<100x128xf32>
    %c0_i32_79 = arith.constant 0 : i32
    %109 = vector.broadcast %c0_i32_79 : i32 to vector<100x128xi32>
    %110 = arith.cmpi eq, %25, %109 : vector<100x128xi32>
    %cst_80 = arith.constant 7.500000e-01 : f32
    %111 = vector.broadcast %cst_80 : f32 to vector<100x128xf32>
    %112 = arith.mulf %111, %91 : vector<100x128xf32>
    %cst_81 = arith.constant 2.500000e-01 : f32
    %113 = vector.broadcast %cst_81 : f32 to vector<100x128xf32>
    %114 = arith.mulf %113, %90 : vector<100x128xf32>
    %115 = arith.addf %112, %114 : vector<100x128xf32>
    %cst_82 = arith.constant 0.000000e+00 : f32
    %116 = vector.broadcast %cst_82 : f32 to vector<100x128xf32>
    %117 = arith.select %110, %116, %115 : vector<100x128xi1>, vector<100x128xf32>
    %c99_i32_83 = arith.constant 99 : i32
    %118 = vector.broadcast %c99_i32_83 : i32 to vector<100x128xi32>
    %119 = arith.cmpi eq, %25, %118 : vector<100x128xi32>
    %cst_84 = arith.constant 2.500000e-01 : f32
    %120 = vector.broadcast %cst_84 : f32 to vector<100x128xf32>
    %121 = arith.mulf %120, %90 : vector<100x128xf32>
    %cst_85 = arith.constant 7.500000e-01 : f32
    %122 = vector.broadcast %cst_85 : f32 to vector<100x128xf32>
    %123 = arith.mulf %122, %92 : vector<100x128xf32>
    %124 = arith.addf %121, %123 : vector<100x128xf32>
    %cst_86 = arith.constant 0.000000e+00 : f32
    %125 = vector.broadcast %cst_86 : f32 to vector<100x128xf32>
    %126 = arith.select %119, %125, %124 : vector<100x128xi1>, vector<100x128xf32>
    %127 = tpu.concatenate %117, %103, %108 in 1 : vector<100x128xf32>, vector<100x128xf32>, vector<100x128xf32> -> vector<100x384xf32>
    %128 = tpu.concatenate %103, %108, %126 in 1 : vector<100x128xf32>, vector<100x128xf32>, vector<100x128xf32> -> vector<100x384xf32>
    %cst_87 = arith.constant dense<0.000000e+00> : vector<2x100xf32>
    %129 = tpu.matmul %1, %127, %cst_87 {dimension_numbers = #tpu.dot_dimension_numbers<[1], [1], [0], [0], [0, 0, 1, 0], [], []>} : vector<2x384xf32>, vector<100x384xf32>, vector<2x100xf32> -> vector<2x100xf32>
    %130 = vector.broadcast %2 : vector<2x1xf32> to vector<2x100xf32>
    %131 = arith.addf %129, %130 : vector<2x100xf32>
    %c1_88 = arith.constant 1 : index
    %c0_89 = arith.constant 0 : index
    %c0_90 = arith.constant 0 : index
    %132 = vector.load %arg8[%c1_88, %c0_89, %c0_90] : memref<2x2x100xf32, #tpu.memory_space<vmem>>, vector<1x2x100xf32>
    %133 = vector.shape_cast %132 : vector<1x2x100xf32> to vector<2x100xf32>
    %134 = vector.shape_cast %131 : vector<2x100xf32> to vector<1x2x100xf32>
    tpu.vector_store %arg8[%c1_88, %c0_89, %c0_90], %134 {strides = array<i32>} : memref<2x2x100xf32, #tpu.memory_space<vmem>>, vector<1x2x100xf32>,
    %cst_91 = arith.constant dense<0.000000e+00> : vector<2x100xf32>
    %135 = tpu.matmul %1, %128, %cst_91 {dimension_numbers = #tpu.dot_dimension_numbers<[1], [1], [0], [0], [0, 0, 1, 0], [], []>} : vector<2x384xf32>, vector<100x384xf32>, vector<2x100xf32> -> vector<2x100xf32>
    %136 = vector.broadcast %2 : vector<2x1xf32> to vector<2x100xf32>
    %137 = arith.addf %135, %136 : vector<2x100xf32>
    %c1_92 = arith.constant 1 : index
    %c0_93 = arith.constant 0 : index
    %c0_94 = arith.constant 0 : index
    %138 = vector.load %arg9[%c1_92, %c0_93, %c0_94] : memref<2x2x100xf32, #tpu.memory_space<vmem>>, vector<1x2x100xf32>
    %139 = vector.shape_cast %138 : vector<1x2x100xf32> to vector<2x100xf32>
    %140 = vector.shape_cast %137 : vector<2x100xf32> to vector<1x2x100xf32>
    tpu.vector_store %arg9[%c1_92, %c0_93, %c0_94], %140 {strides = array<i32>} : memref<2x2x100xf32, #tpu.memory_space<vmem>>, vector<1x2x100xf32>,
    return
  }
}

</mosaic_0001>

<bundles_post_ra>
// kernel: decoder_forward.1
= control target key start
LH: loop header
LB: loop body
LE: loop exit
PB: predicated region body
PF: predicated region fallthrough
CT: control target
= control target key end

     0   :  { %15 = vsyncpa [#allocation6], 0  ;;  %s4235_s0 = inlined_call_operand.vmem [shape: f32[2,32], index: 0, kind: input, shape index: {}]   ;;  %s4236_s1 = inlined_call_operand.hbm [shape: f32[32,64], index: 1, kind: input, shape index: {}]   ;;  %s4237_s2 = inlined_call_operand.hbm [shape: f32[1,64], index: 2, kind: input, shape index: {}]   ;;  %s4238_s3 = inlined_call_operand.hbm [shape: f32[64,512], index: 3, kind: input, shape index: {}]   ;;  %s4239_s4 = inlined_call_operand.vmem [shape: f32[1,512], index: 4, kind: input, shape index: {}]   ;;  %s4240_s5 = inlined_call_operand.hbm [shape: f32[128,512], index: 5, kind: input, shape index: {}]   ;;  %s4241_s6 = inlined_call_operand.vmem [shape: f32[2,384], index: 6, kind: input, shape index: {}]   ;;  %s4242_s7 = inlined_call_operand.vmem [shape: f32[2,1], index: 7, kind: input, shape index: {}]   ;;  %s4243_s8 = inlined_call_operand.vmem [shape: f32[2,2,100], index: 8, kind: output, shape index: {0}]   ;;  %s4244_s9 = inlined_call_operand.vmem [shape: f32[2,2,100], index: 9, kind: output, shape index: {1}]  }
   0x1   :  { %16 = vsyncpa [#allocation8], 0 }
   0x2   :  { %17 = vsyncpa [#allocation11], 0  ;;  %s2916_s30 = smov [#allocation7]   ;;  %s2917_s11 = smov [#allocation5]  }
   0x3   :  { %s38_s10 = sshll.u32 %s2916_s30, 4  ;;  %s25_s12 = sshll.u32 %s2917_s11, 4  ;;  %s39_s10 = int_to_ptr.vmem [resolvable:$true] %s38_s10  ;;  %s26_s12 = int_to_ptr.vmem [resolvable:$true] %s25_s12 }
   0x4   :  { %s2814_s13 = scalar_lea.vmem %s39_s10, 16  ;;  %s2818_s14 = scalar_lea.vmem %s39_s10, 32 }
   0x5   :  { %p2815_p0 = scmp.ne.s32.totalorder %s39_s10, %s2814_s13  ;;  %p2819_p1 = scmp.lt.s32.totalorder %s39_s10, %s39_s10 }
   0x6   :  { %p2820_p2 = scmp.lt.s32.totalorder %s2818_s14, %s2814_s13 }
   0x8   :  { %p2821_p3 = por %p2820_p2, %p2819_p1 }
   0xa   :  { %p2822_p4 = pnand %p2821_p3, %p2815_p0 }
   0xc   :  { %2825 = shalt.err (!%p2822_p4)
}
   0xd   :  { %41 = dma.hbm_to_vmem [thread:$0]  %s4237_s2, 16, %s39_s10, [#allocation8]  }
   0xe   :  { %s2834_s17 = scalar_lea.vmem %s26_s12, 512  ;;  %p2839_p6 = scmp.lt.s32.totalorder %s26_s12, %s26_s12 }
   0xf   :  { %p2835_p5 = scmp.ne.s32.totalorder %s26_s12, %s2834_s17  ;;  %p2840_p7 = scmp.lt.s32.totalorder %s2834_s17, %s2834_s17 }
  0x11   :  { %p2841_p8 = por %p2840_p7, %p2839_p6 }
  0x13   :  { %p2842_p9 = pnand %p2841_p8, %p2835_p5 }
  0x15   :  { %2845 = shalt.err (!%p2842_p9)
}
  0x16   :  { %s2918_s18 = smov 128   ;;  %s2919_s19 = smov 8  }
  0x17   :  { %31 = dma.hbm_to_vmem [thread:$0]  %s4236_s1, 512, %s26_s12, [#allocation6], %s2918_s18, %s2918_s18, %s2919_s19  }
  0x18   :  { %s2920_s22 = smov [#allocation9]  }
  0x19   :  { %s47_s23 = sshll.u32 %s2920_s22, 4  ;;  %s48_s23 = int_to_ptr.vmem [resolvable:$true] %s47_s23 }
  0x1a   :  { %s2854_s24 = scalar_lea.vmem %s48_s23, 4096  ;;  %p2859_p11 = scmp.lt.s32.totalorder %s48_s23, %s48_s23 }
  0x1b   :  { %p2855_p10 = scmp.ne.s32.totalorder %s48_s23, %s2854_s24  ;;  %p2860_p12 = scmp.lt.s32.totalorder %s2854_s24, %s2854_s24 }
  0x1d   :  { %p2861_p13 = por %p2860_p12, %p2859_p11 }
  0x1f   :  { %p2862_p0 = pnand %p2861_p13, %p2855_p10 }
  0x21   :  { %2865 = shalt.err (!%p2862_p0)
}
  0x22   :  { %s2921_s2 = smov 512   ;;  %s2922_s25 = smov 32  }
  0x23   :  { %53 = dma.hbm_to_vmem [thread:$0]  %s4238_s3, 4096, %s48_s23, [#allocation8], %s2921_s2, %s2921_s2, %s2922_s25  }
  0x24   :  { %s2923_s28 = smov [#allocation10]  }
  0x25   :  { %s61_s29 = sshll.u32 %s2923_s28, 4  ;;  %s62_s29 = int_to_ptr.vmem [resolvable:$true] %s61_s29 }
  0x26   :  { %s2874_s1 = scalar_lea.vmem %s62_s29, 8192  ;;  %p2879_p2 = scmp.lt.s32.totalorder %s62_s29, %s62_s29 }
  0x27   :  { %p2875_p1 = scmp.ne.s32.totalorder %s62_s29, %s2874_s1  ;;  %p2880_p3 = scmp.lt.s32.totalorder %s2874_s1, %s2874_s1 }
  0x29   :  { %p2881_p4 = por %p2880_p3, %p2879_p2 }
  0x2b   :  { %p2882_p5 = pnand %p2881_p4, %p2875_p1 }
  0x2d   :  { %2885 = shalt.err (!%p2882_p5)
}
  0x2e   :  { %67 = dma.hbm_to_vmem [thread:$0]  %s4240_s5, 8192, %s62_s29, [#allocation11], %s2921_s2, %s2921_s2, %s2922_s25  }
  0x2f   :  { %2898 = dma.done.wait [#allocation6], 512  }
  0x30   :  { %2899 = vsyncadd [#allocation6], 4294966784 }
  0x31   :  { %2900 = dma.done.wait [#allocation8], 4112  }
  0x32   :  { %2901 = vsyncadd [#allocation8], 4294963184 }
  0x33   :  { %2902 = dma.done.wait [#allocation11], 8192  }
  0x34   :  { %2903 = vsyncadd [#allocation11], 4294959104  ;;  %v4245_v0 = vmov 0.0   ;;  %vm2925_vm0 = vmmov 0   ;;  %v2996_v1 = vld [vmem:[#allocation10] sm:$0xff]  ;;  %v2998_v2 = vld [vmem:[#allocation10 + $0x8] sm:$0xff] }
  0x35   :  { %2500 = vmatprep.subr.mxu0 %v4245_v0  ;;  %2508 = vmatprep.mubr.msk.f32.mxu0 %vm2925_vm0, %v4245_v0  ;;  %4276 = vst [vmem:[#allocation15_spill] sm:$0xff] %v2996_v1  ;;  %4277 = vst [vmem:[#allocation16_spill] sm:$0xff] %v2998_v2  ;;  %v3000_v3 = vld [vmem:[#allocation10 + $0x10] sm:$0xff]  ;;  %v3002_v4 = vld [vmem:[#allocation10 + $0x18] sm:$0xff]  ;;  %vm162_vm1 = vcmask 261120   ;;  %vm290_vm2 = vcmask 523264  }
  0x36   :  { %358 = vmatprep.mubr.f32.mxu1 %v4245_v0  ;;  %4278 = vst [vmem:[#allocation17_spill] sm:$0xff] %v3000_v3  ;;  %4279 = vst [vmem:[#allocation18_spill] sm:$0xff] %v3002_v4  ;;  %v3004_v5 = vld [vmem:[#allocation10 + $0x20] sm:$0xff]  ;;  %v3006_v6 = vld [vmem:[#allocation10 + $0x28] sm:$0xff] }
  0x37   :  { %4280 = vst [vmem:[#allocation19_spill] sm:$0xff] %v3004_v5  ;;  %4281 = vst [vmem:[#allocation20_spill] sm:$0xff] %v3006_v6  ;;  %v3008_v7 = vld [vmem:[#allocation10 + $0x30] sm:$0xff]  ;;  %v3010_v8 = vld [vmem:[#allocation10 + $0x38] sm:$0xff] }
  0x38   :  { %4282 = vst [vmem:[#allocation21_spill] sm:$0xff] %v3008_v7  ;;  %4283 = vst [vmem:[#allocation22_spill] sm:$0xff] %v3010_v8  ;;  %v3012_v9 = vld [vmem:[#allocation10 + $0x40] sm:$0xff]  ;;  %v3014_v10 = vld [vmem:[#allocation10 + $0x48] sm:$0xff]  ;;  %v4299_v8 = vmov 0.0  }
  0x39   :  { %4284 = vst [vmem:[#allocation23_spill] sm:$0xff] %v3012_v9  ;;  %4285 = vst [vmem:[#allocation24_spill] sm:$0xff] %v3014_v10  ;;  %v3016_v11 = vld [vmem:[#allocation10 + $0x50] sm:$0xff]  ;;  %v3018_v12 = vld [vmem:[#allocation10 + $0x58] sm:$0xff] }
  0x3a   :  { %4286 = vst [vmem:[#allocation25_spill] sm:$0xff] %v3016_v11  ;;  %4287 = vst [vmem:[#allocation26_spill] sm:$0xff] %v3018_v12  ;;  %v3020_v13 = vld [vmem:[#allocation10 + $0x60] sm:$0xff]  ;;  %v3022_v14 = vld [vmem:[#allocation10 + $0x68] sm:$0xff] }
  0x3b   :  { %4288 = vst [vmem:[#allocation27_spill] sm:$0xff] %v3020_v13  ;;  %4289 = vst [vmem:[#allocation28_spill] sm:$0xff] %v3022_v14  ;;  %v3024_v15 = vld [vmem:[#allocation10 + $0x70] sm:$0xff]  ;;  %v3026_v16 = vld [vmem:[#allocation10 + $0x78] sm:$0xff] }
  0x3c   :  { %4290 = vst [vmem:[#allocation29_spill] sm:$0xff] %v3024_v15  ;;  %4291 = vst [vmem:[#allocation30_spill] sm:$0xff] %v3026_v16  ;;  %v3028_v17 = vld [vmem:[#allocation10 + $0x80] sm:$0xff]  ;;  %v3030_v18 = vld [vmem:[#allocation10 + $0x88] sm:$0xff] }
  0x3d   :  { %4292 = vst [vmem:[#allocation31_spill] sm:$0xff] %v3028_v17  ;;  %4293 = vst [vmem:[#allocation32_spill] sm:$0xff] %v3030_v18  ;;  %v3032_v19 = vld [vmem:[#allocation10 + $0x90] sm:$0xff]  ;;  %v3034_v20 = vld [vmem:[#allocation10 + $0x98] sm:$0xff]  ;;  %v3163_v18 = vmov 0.0  }
  0x3e   :  { %4294 = vst [vmem:[#allocation33_spill] sm:$0xff] %v3032_v19  ;;  %4295 = vst [vmem:[#allocation34_spill] sm:$0xff] %v3034_v20  ;;  %v3036_v21 = vld [vmem:[#allocation10 + $0xa0] sm:$0xff]  ;;  %v3038_v22 = vld [vmem:[#allocation10 + $0xa8] sm:$0xff]  ;;  %v3161_v20 = vmov 0.0  }
  0x3f   :  { %v3040_v23 = vld [vmem:[#allocation10 + $0xb0] sm:$0xff]  ;;  %v3042_v24 = vld [vmem:[#allocation10 + $0xb8] sm:$0xff]  ;;  %v3044_v25 = vld [vmem:[#allocation10 + $0xc0] sm:$0xff] }
  0x40   :  { %v3046_v26 = vld [vmem:[#allocation10 + $0xc8] sm:$0xff]  ;;  %v3048_v27 = vld [vmem:[#allocation10 + $0xd0] sm:$0xff]  ;;  %v3050_v28 = vld [vmem:[#allocation10 + $0xd8] sm:$0xff] }
  0x41   :  { %v3052_v29 = vld [vmem:[#allocation10 + $0xe0] sm:$0xff]  ;;  %v3054_v30 = vld [vmem:[#allocation10 + $0xe8] sm:$0xff]  ;;  %v3056_v31 = vld [vmem:[#allocation10 + $0xf0] sm:$0xff] }
  0x42   :  { %v3058_v32 = vld [vmem:[#allocation10 + $0xf8] sm:$0xff]  ;;  %v3060_v33 = vld [vmem:[#allocation10 + $0x100] sm:$0xff]  ;;  %v3062_v34 = vld [vmem:[#allocation10 + $0x108] sm:$0xff] }
  0x43   :  { %v3064_v35 = vld [vmem:[#allocation10 + $0x110] sm:$0xff]  ;;  %v3066_v36 = vld [vmem:[#allocation10 + $0x118] sm:$0xff]  ;;  %v3068_v37 = vld [vmem:[#allocation10 + $0x120] sm:$0xff] }
  0x44   :  { %v3070_v38 = vld [vmem:[#allocation10 + $0x128] sm:$0xff]  ;;  %v3072_v39 = vld [vmem:[#allocation10 + $0x130] sm:$0xff]  ;;  %v3074_v40 = vld [vmem:[#allocation10 + $0x138] sm:$0xff] }
  0x45   :  { %v3076_v41 = vld [vmem:[#allocation10 + $0x140] sm:$0xff]  ;;  %v3078_v42 = vld [vmem:[#allocation10 + $0x148] sm:$0xff]  ;;  %v3080_v43 = vld [vmem:[#allocation10 + $0x150] sm:$0xff] }
  0x46   :  { %v3082_v44 = vld [vmem:[#allocation10 + $0x158] sm:$0xff]  ;;  %v3084_v45 = vld [vmem:[#allocation10 + $0x160] sm:$0xff]  ;;  %v3086_v46 = vld [vmem:[#allocation10 + $0x168] sm:$0xff] }
  0x47   :  { %v3088_v47 = vld [vmem:[#allocation10 + $0x170] sm:$0xff]  ;;  %v3090_v48 = vld [vmem:[#allocation10 + $0x178] sm:$0xff]  ;;  %v3092_v49 = vld [vmem:[#allocation10 + $0x180] sm:$0xff] }
  0x48   :  { %v3094_v50 = vld [vmem:[#allocation10 + $0x188] sm:$0xff]  ;;  %v3096_v51 = vld [vmem:[#allocation10 + $0x190] sm:$0xff]  ;;  %v3098_v52 = vld [vmem:[#allocation10 + $0x198] sm:$0xff] }
  0x49   :  { %v3100_v53 = vld [vmem:[#allocation10 + $0x1a0] sm:$0xff]  ;;  %v3102_v54 = vld [vmem:[#allocation10 + $0x1a8] sm:$0xff]  ;;  %v3104_v55 = vld [vmem:[#allocation10 + $0x1b0] sm:$0xff] }
  0x4a   :  { %v3106_v56 = vld [vmem:[#allocation10 + $0x1b8] sm:$0xff]  ;;  %v3108_v57 = vld [vmem:[#allocation10 + $0x1c0] sm:$0xff]  ;;  %v3110_v58 = vld [vmem:[#allocation10 + $0x1c8] sm:$0xff] }
  0x4b   :  { %v3112_v59 = vld [vmem:[#allocation10 + $0x1d0] sm:$0xff]  ;;  %v3114_v60 = vld [vmem:[#allocation10 + $0x1d8] sm:$0xff]  ;;  %v3116_v61 = vld [vmem:[#allocation10 + $0x1e0] sm:$0xff] }
  0x4c   :  { %v3118_v62 = vld [vmem:[#allocation10 + $0x1e8] sm:$0xff]  ;;  %v3120_v63 = vld [vmem:[#allocation10 + $0x1f0] sm:$0xff]  ;;  %v3122_v0 = vld [vmem:[#allocation10 + $0x1f8] sm:$0xff] }
  0x4d   :  { %4296 = vst [vmem:[#allocation35_spill] sm:$0xff] %v3122_v0  ;;  %v3127_v3 = vld [vmem:[%s4241_s6] sm:$0x3f]  ;;  %v154_v1 = vld [vmem:[#allocation5 + $0x18] sm:$0xff]  ;;  %v153_v7 = vld [vmem:[#allocation5 + $0x10] sm:$0xff] }
  0x4e   :  { %4297 = vst [vmem:[#allocation36_spill] sm:$0xff] %v3127_v3  ;;  %v3132_v4 = vld [vmem:[%s4242_s7] sm:$0x3]  ;;  %2501 = vmatpush3.msra.mxu0 %v154_v1  ;;  %v265_v2 = vld [vmem:[#allocation9 + $0xe8] sm:$0xff]  ;;  %v151_v3 = vld [vmem:[#allocation5] sm:$0xff] }
  0x4f   :  { %4298 = vst [vmem:[#allocation37_spill] sm:$0xff] %v3132_v4  ;;  %2502 = vmatprep.subr.mxu0 %v4299_v8  ;;  %v152_v5 = vld [vmem:[#allocation5 + $0x8] sm:$0xff]  ;;  %310 = vmatprep.subr.mxu1 %v265_v2  ;;  %v267_v4 = vld [vmem:[#allocation9 + $0xf8] sm:$0xff]  ;;  %v266_v2 = vld [vmem:[#allocation9 + $0xf0] sm:$0xff] }
  0x50   :  { %v264_v11 = vld [vmem:[#allocation9 + $0xe0] sm:$0xff]  ;;  %2503 = vmatpush3.msra.mxu0 %v153_v7  ;;  %v261_v6 = vld [vmem:[#allocation9 + $0xc8] sm:$0xff]  ;;  %v259_v13 = vld [vmem:[#allocation9 + $0xb8] sm:$0xff] }
  0x51   :  { %311 = vmatpush1.msra.mxu1 %v264_v11  ;;  %v260_v9 = vld [vmem:[#allocation9 + $0xc0] sm:$0xff]  ;;  %2504 = vmatprep.subr.mxu0 %v4299_v8  ;;  %v257_v12 = vld [vmem:[#allocation9 + $0xa8] sm:$0xff]  ;;  %v263_v11 = vld [vmem:[#allocation9 + $0xd8] sm:$0xff] }
  0x52   :  { %312 = vmatprep.subr.mxu1 %v261_v6  ;;  %2505 = vmatpush3.msra.mxu0 %v152_v5  ;;  %v150_v1 = vld [vmem:[%s4235_s0] sm:$0x3]  ;;  %v253_v7 = vld [vmem:[#allocation9 + $0x88] sm:$0xff]  ;;  %v262_v5 = vld [vmem:[#allocation9 + $0xd0] sm:$0xff] }
  0x53   :  { %313 = vmatpush1.msra.mxu1 %v260_v9  ;;  %v256_v10 = vld [vmem:[#allocation9 + $0xa0] sm:$0xff]  ;;  %2506 = vmatprep.subr.mxu0 %v4299_v8  ;;  %v249_v6 = vld [vmem:[#allocation9 + $0x68] sm:$0xff]  ;;  %v258_v9 = vld [vmem:[#allocation9 + $0xb0] sm:$0xff] }
  0x54   :  { %314 = vmatprep.subr.mxu1 %v257_v12  ;;  %2507 = vmatpush3.msra.mxu0 %v151_v3  ;;  %v252_v15 = vld [vmem:[#allocation9 + $0x80] sm:$0xff]  ;;  %v245_v14 = vld [vmem:[#allocation9 + $0x48] sm:$0xff]  ;;  %v255_v19 = vld [vmem:[#allocation9 + $0x98] sm:$0xff] }
  0x55   :  { %315 = vmatpush1.msra.mxu1 %v256_v10  ;;  %2509 = vmatmul.mubr.msk.f32.vlgmr.msra.gmra.mxu0 %vm162_vm1, %v150_v1  ;;  %v248_v16 = vld [vmem:[#allocation9 + $0x60] sm:$0xff]  ;;  %v254_v3 = vld [vmem:[#allocation9 + $0x90] sm:$0xff]  ;;  %v241_v10 = vld [vmem:[#allocation9 + $0x28] sm:$0xff] }
  0x56   :  { %381 = vmatprep.subr.mxu0 %v267_v4  ;;  %316 = vmatprep.subr.mxu1 %v253_v7  ;;  %v244_v12 = vld [vmem:[#allocation9 + $0x40] sm:$0xff]  ;;  %v251_v4 = vld [vmem:[#allocation9 + $0x78] sm:$0xff]  ;;  %v250_v1 = vld [vmem:[#allocation9 + $0x70] sm:$0xff] }
  0x57   :  { %382 = vmatpush1.msra.mxu0 %v266_v2  ;;  %317 = vmatpush1.msra.mxu1 %v252_v15  ;;  %v247_v2 = vld [vmem:[#allocation9 + $0x58] sm:$0xff]  ;;  %v246_v15 = vld [vmem:[#allocation9 + $0x50] sm:$0xff] }
  0x58   :  { %383 = vmatprep.subr.mxu0 %v263_v11  ;;  %318 = vmatprep.subr.mxu1 %v249_v6  ;;  %v243_v7 = vld [vmem:[#allocation9 + $0x38] sm:$0xff]  ;;  %v236_v11 = vld [vmem:[#allocation9] sm:$0xff] }
  0x59   :  { %384 = vmatpush1.msra.mxu0 %v262_v5  ;;  %319 = vmatpush1.msra.mxu1 %v248_v16  ;;  %v242_v16 = vld [vmem:[#allocation9 + $0x30] sm:$0xff]  ;;  %v2345_v6 = vld [vmem:[#allocation7] ss:$0 sm:$0xff] }
  0x5a   :  { %385 = vmatprep.subr.mxu0 %v259_v13  ;;  %320 = vmatprep.subr.mxu1 %v245_v14  ;;  %v240_v13 = vld [vmem:[#allocation9 + $0x20] sm:$0xff]  ;;  %v237_v14 = vld [vmem:[#allocation9 + $0x8] sm:$0xff]  ;;  %v238_v5 = vld [vmem:[#allocation9 + $0x10] sm:$0xff] }
  0x5b   :  { %386 = vmatpush1.msra.mxu0 %v258_v9  ;;  %321 = vmatpush1.msra.mxu1 %v244_v12 }
  0x5c   :  { %387 = vmatprep.subr.mxu0 %v255_v19  ;;  %322 = vmatprep.subr.mxu1 %v241_v10  ;;  %v239_v19 = vld [vmem:[#allocation9 + $0x18] sm:$0xff] }
  0x5d   :  { %388 = vmatpush1.msra.mxu0 %v254_v3  ;;  %429 = vmatprep.mubr.f32.mxu0 %v4299_v8  ;;  %v4249_v3 = vlaneseq }
  0x5e   :  { %389 = vmatprep.subr.mxu0 %v251_v4  ;;  %323 = vmatpush1.msra.mxu1 %v240_v13 }
  0x5f   :  { %390 = vmatpush1.msra.mxu0 %v250_v1  ;;  %324 = vmatprep.subr.mxu1 %v237_v14  ;;  %v3144_v10 = vshrl.u32 %v4249_v3, 7 }
  0x60   :  { %391 = vmatprep.subr.mxu0 %v247_v2  ;;  %325 = vmatpush1.msra.mxu1 %v236_v11  ;;  %v268_v2 = vld [vmem:[%s4239_s4] sm:$0xf]  ;;  %s3165_s4 = smov 0  }
  0x61   :  { %392 = vmatpush1.msra.mxu0 %v246_v15  ;;  %v272_v4 = vsub.s32 0, %v3144_v10  ;;  %v280_v1 = vsub.s32 2, %v3144_v10  ;;  %v276_v15 = vsub.s32 1, %v3144_v10 }
  0x62   :  { %393 = vmatprep.subr.mxu0 %v243_v7  ;;  %v284_v7 = vsub.s32 3, %v3144_v10 }
  0x63   :  { %394 = vmatpush1.msra.mxu0 %v242_v16  ;;  %v273_v13 = vrot.slane %v268_v2, %v272_v4  ;;  %v281_v16 = vrot.slane %v268_v2, %v280_v1  ;;  %v277_v14 = vrot.slane %v268_v2, %v276_v15 }
  0x64   :  { %395 = vmatprep.subr.mxu0 %v239_v19  ;;  %v285_v19 = vrot.slane %v268_v2, %v284_v7 }
  0x65   :  { %396 = vmatpush1.msra.mxu0 %v238_v5 }
 0x115   :  { %v232_v9 = vpop.f32.mrf.mxu0 }
 0x116   :  { %v233_v8 = vadd.f32 %v2345_v6, %v232_v9 }
 0x117   :  { %v2510_v12 = vpop.f32.mrf.mxu0 }
 0x118   :  { %2347 = vmatmul.mubr.msk.f32.vlgmr.msra.gmra.mxu1 %vm290_vm2, %v233_v8  ;;  %2348 = vmatmul.mubr.msk.f32.vlgmr.msra.gmra.mxu0 %vm290_vm2, %v233_v8 }
 0x1d8   :  { %v360_v11 = vpop.f32.mrf.mxu1  ;;  %v431_v5 = vpop.f32.mrf.mxu0 }
 0x1d9   :  { %v3153_v6 = vadd.f32 %v360_v11, %v273_v13  ;;  %v3155_v9 = vadd.f32 %v431_v5, %v281_v16 }
 0x1da   :  { %v362_v8 = vpop.f32.mrf.mxu1  ;;  %v433_v12 = vpop.f32.mrf.mxu0 }
 0x1db   :  { %v3157_v3 = vadd.f32 %v362_v8, %v277_v14  ;;  %v3159_v17 = vadd.f32 %v433_v12, %v285_v19 }
 0x1dc LB: > { %444 = vmatprep.subr.mxu0 %v3118_v62  ;;  %v4300_v0 = vld [vmem:[#allocation35_spill] sm:$0xff]  ;;  %v4301_v4 = vld [vmem:[#allocation32_spill] sm:$0xff]  ;;  %v4302_v1 = vld [vmem:[#allocation34_spill] sm:$0xff]  ;;  %v2926_v8 = vmov 0.0   ;;  %s608_s14 = scalar_lea.vmem [#allocation3], %s2914_s4  ;;  %s610_s15 = scalar_lea.vmem [#allocation4], %s2914_s4  ;;  %s2914_s4 = sphi %s3165_s4, %s441_s4   ;;  %v2910_v18 = vphi %v3163_v18, %v607_v18   ;;  %v2906_v20 = vphi %v3161_v20, %v605_v20  }
 0x1dd   : > { %515 = vmatprep.subr.mxu1 %v4300_v0  ;;  %445 = vmatpush1.msra.mxu0 %v3116_v61  ;;  %v4303_v2 = vld [vmem:[#allocation31_spill] sm:$0xff]  ;;  %v4304_v15 = vld [vmem:[#allocation33_spill] sm:$0xff]  ;;  %v4305_v7 = vld [vmem:[#allocation28_spill] sm:$0xff]  ;;  %s441_s4 = sadd.s32 1, %s2914_s4  }
 0x1de   : > { %516 = vmatpush1.msra.mxu1 %v3120_v63  ;;  %446 = vmatprep.subr.mxu0 %v3110_v58  ;;  %v4306_v13 = vld [vmem:[#allocation30_spill] sm:$0xff]  ;;  %v4307_v16 = vld [vmem:[#allocation27_spill] sm:$0xff]  ;;  %v4308_v14 = vld [vmem:[#allocation29_spill] sm:$0xff]  ;;  %p438_p6 = scmp.ge.s32.totalorder %s441_s4, 100  }
 0x1df   : > { %517 = vmatprep.subr.mxu1 %v3114_v60  ;;  %447 = vmatpush1.msra.mxu0 %v3108_v57  ;;  %v4309_v19 = vld [vmem:[#allocation24_spill] sm:$0xff]  ;;  %v4310_v11 = vld [vmem:[#allocation26_spill] sm:$0xff]  ;;  %v4311_v5 = vld [vmem:[#allocation23_spill] sm:$0xff]  ;;  %vm918_vm3 = vcmask (%p438_p6), 519168   ;;  %s2927_s16 = smov (%p438_p6), 64   ;;  %vm773_vm4 = vcmask (%p438_p6), 1043456  }
 0x1e0   : > { %518 = vmatpush1.msra.mxu1 %v3112_v59  ;;  %448 = vmatprep.subr.mxu0 %v3102_v54  ;;  %v4312_v12 = vld [vmem:[#allocation20_spill] sm:$0xff]  ;;  %vm733_vm6 = vcmask (%p438_p6), 818176   ;;  %v619_v59 = vadd.s32 (%p438_p6), 48, %v3144_v10  ;;  %v620_v62 = vadd.s32 (%p438_p6), 56, %v3144_v10 }
 0x1e1   : > { %519 = vmatprep.subr.mxu1 %v3106_v56  ;;  %449 = vmatpush1.msra.mxu0 %v3100_v53  ;;  %v617_v53 = vadd.s32 (%p438_p6), 32, %v3144_v10  ;;  %v618_v56 = vadd.s32 (%p438_p6), 40, %v3144_v10 }
 0x1e2   : > { %520 = vmatpush1.msra.mxu1 %v3104_v55  ;;  %450 = vmatprep.subr.mxu0 %v3094_v50  ;;  %v616_v50 = vadd.s32 (%p438_p6), 24, %v3144_v10 }
 0x1e3   : > { %521 = vmatprep.subr.mxu1 %v3098_v52  ;;  %451 = vmatpush1.msra.mxu0 %v3092_v49 }
 0x1e4   : > { %522 = vmatpush1.msra.mxu1 %v3096_v51  ;;  %452 = vmatprep.subr.mxu0 %v3086_v46  ;;  %v615_v46 = vadd.s32 (%p438_p6), 16, %v3144_v10 }
 0x1e5   : > { %523 = vmatprep.subr.mxu1 %v3090_v48  ;;  %453 = vmatpush1.msra.mxu0 %v3084_v45 }
 0x1e6   : > { %524 = vmatpush1.msra.mxu1 %v3088_v47  ;;  %454 = vmatprep.subr.mxu0 %v3078_v42  ;;  %v614_v42 = vadd.s32 (%p438_p6), 8, %v3144_v10 }
 0x1e7   : > { %525 = vmatprep.subr.mxu1 %v3082_v44  ;;  %455 = vmatpush1.msra.mxu0 %v3076_v41 }
 0x1e8   : > { %526 = vmatpush1.msra.mxu1 %v3080_v43  ;;  %456 = vmatprep.subr.mxu0 %v3070_v38 }
 0x1e9   : > { %527 = vmatprep.subr.mxu1 %v3074_v40  ;;  %457 = vmatpush1.msra.mxu0 %v3068_v37  ;;  %v4322_v37 = vlaneseq (%p438_p6) }
 0x1ea   : > { %528 = vmatpush1.msra.mxu1 %v3072_v39  ;;  %458 = vmatprep.subr.mxu0 %v3062_v34 }
 0x1eb   : > { %529 = vmatprep.subr.mxu1 %v3066_v36  ;;  %459 = vmatpush1.msra.mxu0 %v3060_v33  ;;  %v3295_v38 = vand.u32 (%p438_p6), 127, %v4322_v37 }
 0x1ec   : > { %530 = vmatpush1.msra.mxu1 %v3064_v35  ;;  %460 = vmatprep.subr.mxu0 %v3054_v30 }
 0x1ed   : > { %531 = vmatprep.subr.mxu1 %v3058_v32  ;;  %461 = vmatpush1.msra.mxu0 %v3052_v29  ;;  %v628_v41 = vadd.s32 (%p438_p6), %v3295_v38, %v3144_v10  ;;  %v629_v45 = vadd.s32 (%p438_p6), %v3295_v38, %v614_v42  ;;  %v630_v49 = vadd.s32 (%p438_p6), %v3295_v38, %v615_v46 }
 0x1ee   : > { %532 = vmatpush1.msra.mxu1 %v3056_v31  ;;  %462 = vmatprep.subr.mxu0 %v3046_v26  ;;  %v631_v52 = vadd.s32 (%p438_p6), %v3295_v38, %v616_v50  ;;  %v632_v55 = vadd.s32 (%p438_p6), %v3295_v38, %v617_v53  ;;  %v633_v58 = vadd.s32 (%p438_p6), %v3295_v38, %v618_v56 }
 0x1ef   : > { %533 = vmatprep.subr.mxu1 %v3050_v28  ;;  %463 = vmatpush1.msra.mxu0 %v3044_v25  ;;  %vm641_vm5 = vcmp.eq.s32.totalorder (%p438_p6), %v628_v41, 99  ;;  %vm642_vm7 = vcmp.eq.s32.totalorder (%p438_p6), %v629_v45, 99  ;;  %vm643_vm8 = vcmp.eq.s32.totalorder (%p438_p6), %v630_v49, 99  ;;  %v634_v61 = vadd.s32 (%p438_p6), %v3295_v38, %v619_v59 }
 0x1f0   : > { %534 = vmatpush1.msra.mxu1 %v3048_v27  ;;  %464 = vmatprep.subr.mxu0 %v3038_v22  ;;  %vm644_vm9 = vcmp.eq.s32.totalorder (%p438_p6), %v631_v52, 99  ;;  %vm645_vm10 = vcmp.eq.s32.totalorder (%p438_p6), %v632_v55, 99  ;;  %vm646_vm11 = vcmp.eq.s32.totalorder (%p438_p6), %v633_v58, 99 }
 0x1f1   : > { %535 = vmatprep.subr.mxu1 %v3042_v24  ;;  %465 = vmatpush1.msra.mxu0 %v3036_v21  ;;  %vm647_vm12 = vcmp.eq.s32.totalorder (%p438_p6), %v634_v61, 99 }
 0x1f2   : > { %536 = vmatpush1.msra.mxu1 %v3040_v23  ;;  %466 = vmatprep.subr.mxu0 %v4301_v4  ;;  %v4313_v4 = vld [vmem:[#allocation25_spill] sm:$0xff] }
 0x1f3   : > { %537 = vmatprep.subr.mxu1 %v4302_v1  ;;  %467 = vmatpush1.msra.mxu0 %v4303_v2  ;;  %v4314_v1 = vld [vmem:[#allocation19_spill] sm:$0xff]  ;;  %v4315_v2 = vld [vmem:[#allocation22_spill] sm:$0xff] }
 0x1f4   : > { %538 = vmatpush1.msra.mxu1 %v4304_v15  ;;  %468 = vmatprep.subr.mxu0 %v4305_v7  ;;  %v4316_v15 = vld [vmem:[#allocation16_spill] sm:$0xff]  ;;  %v4317_v7 = vld [vmem:[#allocation21_spill] sm:$0xff] }
 0x1f5   : > { %539 = vmatprep.subr.mxu1 %v4306_v13  ;;  %469 = vmatpush1.msra.mxu0 %v4307_v16  ;;  %v4318_v13 = vld [vmem:[#allocation15_spill] sm:$0xff]  ;;  %v4319_v16 = vld [vmem:[#allocation18_spill] sm:$0xff] }
 0x1f6   : > { %540 = vmatpush1.msra.mxu1 %v4308_v14  ;;  %470 = vmatprep.subr.mxu0 %v4309_v19  ;;  %v4320_v14 = vld [vmem:[#allocation17_spill] sm:$0xff] }
 0x1f7   : > { %541 = vmatprep.subr.mxu1 %v4310_v11  ;;  %471 = vmatpush1.msra.mxu0 %v4311_v5 }
 0x1f8   : > { %508 = vmatprep.mubr.f32.mxu0 %v2926_v8  ;;  %472 = vmatprep.subr.mxu0 %v4312_v12 }
 0x1f9   : > { %542 = vmatpush1.msra.mxu1 %v4313_v4  ;;  %473 = vmatpush1.msra.mxu0 %v4314_v1 }
 0x1fa   : > { %543 = vmatprep.subr.mxu1 %v4315_v2  ;;  %474 = vmatprep.subr.mxu0 %v4316_v15 }
 0x1fb   : > { %544 = vmatpush1.msra.mxu1 %v4317_v7  ;;  %475 = vmatpush1.msra.mxu0 %v4318_v13 }
 0x1fc   : > { %545 = vmatprep.subr.mxu1 %v4319_v16  ;;  %509 = vmatmul.mubr.f32.vlgmr.msra.gmra.mxu0 %v2910_v18 }
 0x1fd   : > { %546 = vmatpush1.msra.mxu1 %v4320_v14  ;;  %579 = vmatprep.mubr.f32.mxu1 %v2926_v8 }
 0x1fe   : > { %580 = vmatmul.mubr.f32.vlgmr.msra.gmra.mxu1 %v2910_v18 }
 0x2bc   : > { %v510_v19 = vpop.f32.mrf.mxu0 }
 0x2bd   : > { %v586_v11 = vadd.f32 %v510_v19, %v3153_v6  ;;  %v621_v6 = vadd.s32 (%p438_p6), 64, %v3144_v10 }
 0x2be   : > { %v512_v5 = vpop.f32.mrf.mxu0  ;;  %v581_v12 = vpop.f32.mrf.mxu1 }
 0x2bf   : > { %v590_v4 = vmul.f32 0.5, %v586_v11  ;;  %v587_v1 = vadd.f32 %v512_v5, %v3157_v3  ;;  %v588_v13 = vadd.f32 %v581_v12, %v3155_v9  ;;  %v635_v3 = vadd.s32 (%p438_p6), %v3295_v38, %v620_v62 }
 0x2c0   : > { %v583_v2 = vpop.f32.mrf.mxu1 }
 0x2c1   : > { %2795 = vtanh.f32 %v590_v4  ;;  %v591_v15 = vmul.f32 0.5, %v587_v1  ;;  %v589_v7 = vadd.f32 %v583_v2, %v3159_v17  ;;  %v592_v8 = vmul.f32 0.5, %v588_v13 }
 0x2c2   :  { %vm648_vm13 = vcmp.eq.s32.totalorder (%p438_p6), %v635_v3, 99 }
 0x2c3   : > { %2797 = vtanh.f32 %v591_v15 }
 0x2c4   : > { %2799 = vtanh.f32 %v589_v7 }
 0x2c5   : > { %2801 = vtanh.f32 %v592_v8 }
 0x2ce   : > { %v2796_v16 = vpop.eup %2795 }
 0x2cf   : > { %v596_v18 = vmul.f32 0.5, %v2796_v16  ;;  %v4321_v16 = vmov (%p438_p6), 0.0  }
 0x2d0   : > { %v2798_v14 = vpop.eup %2797  ;;  %2511 = vmatprep.subr.mxu0 (%p438_p6), %v4321_v16  ;;  %2537 = vmatprep.mubr.msk.f32.mxu0 (%p438_p6), %vm2925_vm0, %v4321_v16  ;;  %668 = vst [vmem:[#allocation2 + $0x65] sm:$0x1] (%p438_p6), %v4321_v16  ;;  %667 = vst [vmem:[#allocation2] sm:$0x1] (%p438_p6), %v4321_v16  ;;  %v3308_v48 = vsel (%p438_p6), %vm641_vm5, 1.0, %v4321_v16  ;;  %v3319_v51 = vsel (%p438_p6), %vm642_vm7, 1.0, %v4321_v16 }
 0x2d1   : > { %v599_v19 = vadd.f32 0.5, %v596_v18  ;;  %v597_v0 = vmul.f32 0.5, %v2798_v14  ;;  %v2800_v11 = vpop.eup %2799  ;;  %4323 = vst [vmem:[#allocation15_spill] sm:$0xff] (%p438_p6), %v3308_v48  ;;  %4324 = vst [vmem:[#allocation16_spill] sm:$0xff] (%p438_p6), %v3319_v51  ;;  %v3328_v54 = vsel (%p438_p6), %vm643_vm8, 1.0, %v4321_v16  ;;  %v3337_v57 = vsel (%p438_p6), %vm644_vm9, 1.0, %v4321_v16 }
 0x2d2   : > { %v2802_v2 = vpop.eup %2801  ;;  %4325 = vst [vmem:[#allocation17_spill] sm:$0xff] (%p438_p6), %v3328_v54  ;;  %4326 = vst [vmem:[#allocation18_spill] sm:$0xff] (%p438_p6), %v3337_v57  ;;  %v3346_v60 = vsel (%p438_p6), %vm645_vm10, 1.0, %v4321_v16  ;;  %v3355_v63 = vsel (%p438_p6), %vm646_vm11, 1.0, %v4321_v16  ;;  %v3364_v9 = vsel (%p438_p6), %vm647_vm12, 1.0, %v4321_v16  ;;  %v622_v14 = vadd.s32 (%p438_p6), 72, %v3144_v10 }
 0x2d3   : > { %v600_v5 = vadd.f32 0.5, %v597_v0  ;;  %v604_v1 = vmul.f32 %v2800_v11, %v599_v19  ;;  %v598_v15 = vmul.f32 0.5, %v2802_v2  ;;  %4327 = vst [vmem:[#allocation19_spill] sm:$0xff] (%p438_p6), %v3346_v60  ;;  %4328 = vst [vmem:[#allocation20_spill] sm:$0xff] (%p438_p6), %v3355_v63  ;;  %v3373_v19 = vsel (%p438_p6), %vm648_vm13, 1.0, %v4321_v16 }
 0x2d4   :  { %4329 = vst [vmem:[#allocation21_spill] sm:$0xff] (%p438_p6), %v3364_v9  ;;  %4330 = vst [vmem:[#allocation22_spill] sm:$0xff] (%p438_p6), %v3373_v19  ;;  %v637_v11 = vadd.s32 (%p438_p6), %v3295_v38, %v622_v14  ;;  %v624_v2 = vadd.s32 (%p438_p6), 88, %v3144_v10  ;;  %vm972_vm8 = vcmask (%p438_p6), 1048064   ;;  %vm985_vm9 = vcmask (%p438_p6), 1043968  }
 0x2d5   : > { %v603_v4 = vmul.f32 %v2906_v20, %v600_v5  ;;  %v601_v7 = vadd.f32 0.5, %v598_v15  ;;  %v623_v5 = vadd.s32 (%p438_p6), 80, %v3144_v10 }
 0x2d6   :  { %vm650_vm15 = vcmp.eq.s32.totalorder (%p438_p6), %v637_v11, 99 }
 0x2d7   : > { %v605_v20 = vadd.f32 %v604_v1, %v603_v4   ;;  %v638_v1 = vadd.s32 (%p438_p6), %v3295_v38, %v623_v5  ;;  %v3391_v15 = vsel (%p438_p6), %vm650_vm15, 1.0, %v4321_v16  ;;  %v4336_v5 = vld [vmem:[#allocation36_spill] sm:$0xff] (%p438_p6) }
 0x2d8   :  { %4332 = vst [vmem:[#allocation24_spill] sm:$0xff] (%p438_p6), %v3391_v15 }
 0x2d9   : > { %2803 = vtanh.f32 %v605_v20  ;;  %vm651_vm1 = vcmp.eq.s32.totalorder (%p438_p6), %v638_v1, 99 }
 0x2e5   :  { %440 = sbr.rel (!%p438_p6) target bundleno = 476 (0x1dc), region = 87 }
 0x2e6   : > { %v2804_v12 = vpop.eup %2803 }
 0x2e7   : > { %v607_v18 = vmul.f32 %v2804_v12, %v601_v7   ;;  %v639_v7 = vadd.s32 (%p438_p6), %v3295_v38, %v624_v2  ;;  %v3395_v12 = vadd.s32 (%p438_p6), 96, %v3144_v10 }
 0x2e9   : > { %609 = vst [vmem:[%s608_s14] sm:$0x1] %v607_v18  ;;  %611 = vst [vmem:[%s610_s15 - $0x1] sm:$0x2] %v607_v18  ;;  %v636_v18 = vadd.s32 (%p438_p6), %v3295_v38, %v621_v6  ;;  %vm652_vm5 = vcmp.eq.s32.totalorder (%p438_p6), %v639_v7, 99  ;;  %v2928_v6 = vmov (%p438_p6), 1983009808  }
 0x2ea   :  { %vm1064_vm10 = vcmp.eq.s32.totalorder %v3395_v12, 99 }
 0x2eb   :  { %vm649_vm14 = vcmp.eq.s32.totalorder %v636_v18, 99  ;;  %v1242_v18 = vunpack.c.l.s4 %v2928_v6  ;;  %vm3781_vm11 = vmneg %vm1064_vm10 }
 0x2ec   :  { %v3382_v4 = vsel %vm649_vm14, 1.0, %v4321_v16 }
 0x2ed   :  { %4331 = vst [vmem:[#allocation23_spill] sm:$0xff] %v3382_v4  ;;  %v1243_v14 = vunpack.c.0.s8 %v1242_v18 }
 0x2ef   :  { %v3487_v11 = vsub.s32 %v1243_v14, %v3144_v10 }
 0x2f0   :  { %v681_v0 = vld [vmem:[#allocation3 + $0x60] sm:$0xf]  ;;  %v680_v13 = vld [vmem:[#allocation3 + $0x58] sm:$0xff]  ;;  %v679_v8 = vld [vmem:[#allocation3 + $0x50] sm:$0xff] }
 0x2f1   :  { %719 = vrot.lane.b32.xlu0 %v681_v0, %s2927_s16  ;;  %919 = vst.msk [vmem:[#allocation2 + $0x61] sm:$0xf] %vm918_vm3, %v681_v0  ;;  %715 = vrot.lane.b32.xlu1 %v679_v8, %s2927_s16  ;;  %v678_v17 = vld [vmem:[#allocation3 + $0x48] sm:$0xff]  ;;  %v677_v20 = vld [vmem:[#allocation3 + $0x40] sm:$0xff]  ;;  %v676_v21 = vld [vmem:[#allocation3 + $0x38] sm:$0xff]  ;;  %v3402_v0 = vsel %vm651_vm1, 1.0, %v4321_v16  ;;  %v3491_v1 = vrot.slane %v4336_v5, %v3487_v11 }
 0x2f2   :  { %917 = vst.msk [vmem:[#allocation2 + $0x59] sm:$0xff] %vm290_vm2, %v680_v13  ;;  %916 = vst.msk [vmem:[#allocation2 + $0x51] sm:$0xff] %vm290_vm2, %v679_v8  ;;  %v675_v22 = vld [vmem:[#allocation3 + $0x30] sm:$0xff]  ;;  %v674_v23 = vld [vmem:[#allocation3 + $0x28] sm:$0xff]  ;;  %v3411_v8 = vsel %vm652_vm5, 1.0, %v4321_v16 }
 0x2f3   :  { %915 = vst.msk [vmem:[#allocation2 + $0x49] sm:$0xff] %vm290_vm2, %v678_v17  ;;  %914 = vst.msk [vmem:[#allocation2 + $0x41] sm:$0xff] %vm290_vm2, %v677_v20  ;;  %v673_v24 = vld [vmem:[#allocation3 + $0x20] sm:$0xff]  ;;  %v672_v25 = vld [vmem:[#allocation3 + $0x18] sm:$0xff]  ;;  %v3495_v2 = vcombine.high %v3491_v1, %v3491_v1 }
 0x2f4   :  { %913 = vst.msk [vmem:[#allocation2 + $0x39] sm:$0xff] %vm290_vm2, %v676_v21  ;;  %912 = vst.msk [vmem:[#allocation2 + $0x31] sm:$0xff] %vm290_vm2, %v675_v22  ;;  %v671_v26 = vld [vmem:[#allocation3 + $0x10] sm:$0xff]  ;;  %v670_v27 = vld [vmem:[#allocation3 + $0x8] sm:$0xff] }
 0x2f5   :  { %911 = vst.msk [vmem:[#allocation2 + $0x29] sm:$0xff] %vm290_vm2, %v674_v23  ;;  %910 = vst.msk [vmem:[#allocation2 + $0x21] sm:$0xff] %vm290_vm2, %v673_v24  ;;  %v669_v28 = vld [vmem:[#allocation3] sm:$0xff]  ;;  %717 = vrot.lane.b32.xlu0 %v680_v13, %s2927_s16  ;;  %713 = vrot.lane.b32.xlu1 %v678_v17, %s2927_s16  ;;  %v640_v13 = vadd.s32 %v3295_v38, %v3395_v12  ;;  %v1554_v46 = vld [vmem:[#allocation4 + $0x60] sm:$0xf] }
 0x2f6   :  { %909 = vst.msk [vmem:[#allocation2 + $0x19] sm:$0xff] %vm290_vm2, %v672_v25  ;;  %908 = vst.msk [vmem:[#allocation2 + $0x11] sm:$0xff] %vm290_vm2, %v671_v26  ;;  %v3442_v49 = vld [vmem:[#allocation4 + $0x50] sm:$0xff]  ;;  %v3444_v50 = vld [vmem:[#allocation4 + $0x48] sm:$0xff]  ;;  %1323 = vmatprep.mubr.f32.mxu1 %v3495_v2 }
 0x2f7   :  { %907 = vst.msk [vmem:[#allocation2 + $0x9] sm:$0xff] %vm290_vm2, %v670_v27  ;;  %906 = vst.msk [vmem:[#allocation2 + $0x1] sm:$0xff] %vm290_vm2, %v669_v28  ;;  %vm653_vm7 = vcmp.eq.s32.totalorder %v640_v13, 99  ;;  %v3450_v52 = vld [vmem:[#allocation4 + $0x40] sm:$0xff]  ;;  %v3452_v53 = vld [vmem:[#allocation4 + $0x38] sm:$0xff] }
 0x2f8   :  { %4333 = vst [vmem:[#allocation25_spill] sm:$0xff] %v3402_v0  ;;  %4334 = vst [vmem:[#allocation26_spill] sm:$0xff] %v3411_v8  ;;  %v3418_v17 = vsel %vm653_vm7, 1.0, %v4321_v16  ;;  %v3458_v55 = vld [vmem:[#allocation4 + $0x30] sm:$0xff]  ;;  %v3460_v56 = vld [vmem:[#allocation4 + $0x28] sm:$0xff] }
 0x2f9   :  { %711 = vrot.lane.b32.xlu0 %v677_v20, %s2927_s16  ;;  %709 = vrot.lane.b32.xlu1 %v676_v21, %s2927_s16  ;;  %4335 = vst [vmem:[#allocation27_spill] sm:$0xff] %v3418_v17  ;;  %v3466_v58 = vld [vmem:[#allocation4 + $0x20] sm:$0xff]  ;;  %v3468_v59 = vld [vmem:[#allocation4 + $0x18] sm:$0xff]  ;;  %v3474_v61 = vld [vmem:[#allocation4 + $0x10] sm:$0xff] }
 0x2fa   :  { %v3476_v62 = vld [vmem:[#allocation4 + $0x8] sm:$0xff]  ;;  %v3482_v3 = vld [vmem:[#allocation4] sm:$0xff] }
 0x2fd   :  { %707 = vrot.lane.b32.xlu0 %v675_v22, %s2927_s16  ;;  %705 = vrot.lane.b32.xlu1 %v674_v23, %s2927_s16 }
 0x301   :  { %703 = vrot.lane.b32.xlu0 %v673_v24, %s2927_s16  ;;  %701 = vrot.lane.b32.xlu1 %v672_v25, %s2927_s16 }
 0x305   :  { %699 = vrot.lane.b32.xlu0 %v671_v26, %s2927_s16  ;;  %697 = vrot.lane.b32.xlu1 %v670_v27, %s2927_s16 }
 0x309   :  { %695 = vrot.lane.b32.xlu0 %v669_v28, %s2927_s16 }
 0x363   :  { %v720_v29 = vpop.permute.xlu0 %719  ;;  %v716_v30 = vpop.permute.xlu1 %715 }
 0x364   :  { %2512 = vmatpush3.msk.msra.mxu0 %vm773_vm4, %v720_v29 }
 0x365   :  { %2513 = vmatprep.subr.mxu0 %v4321_v16 }
 0x367   :  { %v718_v31 = vpop.permute.xlu0 %717  ;;  %v714_v32 = vpop.permute.xlu1 %713 }
 0x368   :  { %2514 = vmatpush3.msra.mxu0 %v718_v31 }
 0x369   :  { %2515 = vmatprep.subr.mxu0 %v4321_v16 }
 0x36a   :  { %2516 = vmatpush3.msra.mxu0 %v716_v30 }
 0x36b   :  { %2517 = vmatprep.subr.mxu0 %v4321_v16  ;;  %v712_v33 = vpop.permute.xlu0 %711  ;;  %v710_v34 = vpop.permute.xlu1 %709 }
 0x36c   :  { %2518 = vmatpush3.msra.mxu0 %v714_v32 }
 0x36d   :  { %2519 = vmatprep.subr.mxu0 %v4321_v16 }
 0x36e   :  { %2520 = vmatpush3.msra.mxu0 %v712_v33 }
 0x36f   :  { %2521 = vmatprep.subr.mxu0 %v4321_v16  ;;  %v708_v35 = vpop.permute.xlu0 %707  ;;  %v706_v36 = vpop.permute.xlu1 %705 }
 0x370   :  { %2522 = vmatpush3.msra.mxu0 %v710_v34 }
 0x371   :  { %2523 = vmatprep.subr.mxu0 %v4321_v16 }
 0x372   :  { %2524 = vmatpush3.msra.mxu0 %v708_v35 }
 0x373   :  { %2525 = vmatprep.subr.mxu0 %v4321_v16  ;;  %v704_v39 = vpop.permute.xlu0 %703  ;;  %v702_v40 = vpop.permute.xlu1 %701 }
 0x374   :  { %2526 = vmatpush3.msra.mxu0 %v706_v36 }
 0x375   :  { %2527 = vmatprep.subr.mxu0 %v4321_v16 }
 0x376   :  { %2528 = vmatpush3.msra.mxu0 %v704_v39 }
 0x377   :  { %2529 = vmatprep.subr.mxu0 %v4321_v16  ;;  %v700_v43 = vpop.permute.xlu0 %699  ;;  %v698_v44 = vpop.permute.xlu1 %697 }
 0x378   :  { %2530 = vmatpush3.msra.mxu0 %v702_v40 }
 0x379   :  { %2531 = vmatprep.subr.mxu0 %v4321_v16 }
 0x37a   :  { %2532 = vmatpush3.msra.mxu0 %v700_v43 }
 0x37b   :  { %2533 = vmatprep.subr.mxu0 %v4321_v16  ;;  %v696_v47 = vpop.permute.xlu0 %695 }
 0x37c   :  { %2534 = vmatpush3.msra.mxu0 %v698_v44 }
 0x37d   :  { %2535 = vmatprep.subr.mxu0 %v4321_v16 }
 0x37e   :  { %2536 = vmatpush3.msra.mxu0 %v696_v47  ;;  %v3437_v47 = vld [vmem:[#allocation4 + $0x58] sm:$0xff] }
 0x37f   :  { %2538 = vmatmul.mubr.msk.f32.vlgmr.msra.gmra.mxu0 %vm733_vm6, %v3308_v48  ;;  %2576 = vmatprep.subr.mxu0 %v4321_v16 }
 0x380   :  { %2540 = vmatprep.mubr.msk.f32.mxu0 %vm2925_vm0, %v4321_v16 }
 0x383   :  { %2541 = vmatmul.mubr.msk.f32.gmra.mxu0 %vm733_vm6, %v3319_v51 }
 0x384   :  { %2543 = vmatprep.mubr.msk.f32.mxu0 %vm2925_vm0, %v4321_v16 }
 0x387   :  { %2544 = vmatmul.mubr.msk.f32.gmra.mxu0 %vm733_vm6, %v3328_v54 }
 0x388   :  { %2546 = vmatprep.mubr.msk.f32.mxu0 %vm2925_vm0, %v4321_v16 }
 0x38b   :  { %2547 = vmatmul.mubr.msk.f32.gmra.mxu0 %vm733_vm6, %v3337_v57 }
 0x38c   :  { %2549 = vmatprep.mubr.msk.f32.mxu0 %vm2925_vm0, %v4321_v16 }
 0x38f   :  { %2550 = vmatmul.mubr.msk.f32.gmra.mxu0 %vm733_vm6, %v3346_v60 }
 0x390   :  { %2552 = vmatprep.mubr.msk.f32.mxu0 %vm2925_vm0, %v4321_v16 }
 0x393   :  { %2553 = vmatmul.mubr.msk.f32.gmra.mxu0 %vm733_vm6, %v3355_v63 }
 0x394   :  { %2555 = vmatprep.mubr.msk.f32.mxu0 %vm2925_vm0, %v4321_v16 }
 0x397   :  { %2556 = vmatmul.mubr.msk.f32.gmra.mxu0 %vm733_vm6, %v3364_v9 }
 0x398   :  { %2558 = vmatprep.mubr.msk.f32.mxu0 %vm2925_vm0, %v4321_v16 }
 0x39b   :  { %2559 = vmatmul.mubr.msk.f32.gmra.mxu0 %vm733_vm6, %v3373_v19 }
 0x39c   :  { %2561 = vmatprep.mubr.msk.f32.mxu0 %vm2925_vm0, %v4321_v16 }
 0x39f   :  { %2562 = vmatmul.mubr.msk.f32.gmra.mxu0 %vm733_vm6, %v3382_v4 }
 0x3a0   :  { %2564 = vmatprep.mubr.msk.f32.mxu0 %vm2925_vm0, %v4321_v16 }
 0x3a3   :  { %2565 = vmatmul.mubr.msk.f32.gmra.mxu0 %vm733_vm6, %v3391_v15 }
 0x3a4   :  { %2567 = vmatprep.mubr.msk.f32.mxu0 %vm2925_vm0, %v4321_v16 }
 0x3a7   :  { %2568 = vmatmul.mubr.msk.f32.gmra.mxu0 %vm733_vm6, %v3402_v0 }
 0x3a8   :  { %2570 = vmatprep.mubr.msk.f32.mxu0 %vm2925_vm0, %v4321_v16 }
 0x3ab   :  { %2571 = vmatmul.mubr.msk.f32.gmra.mxu0 %vm733_vm6, %v3411_v8 }
 0x3ac   :  { %2573 = vmatprep.mubr.msk.f32.mxu0 %vm2925_vm0, %v4321_v16 }
 0x3af   :  { %2574 = vmatmul.mubr.msk.f32.gmra.mxu0 %vm733_vm6, %v3418_v17 }
 0x3b0   :  { %2602 = vmatprep.mubr.msk.f32.mxu0 %vm2925_vm0, %v4321_v16 }
 0x43f   :  { %v842_v20 = vpop.f32.mrf.mxu0 }
 0x441   :  { %v2539_v21 = vpop.f32.mrf.mxu0 }
 0x443   :  { %v847_v22 = vpop.f32.mrf.mxu0 }
 0x445   :  { %v2542_v23 = vpop.f32.mrf.mxu0 }
 0x447   :  { %v852_v24 = vpop.f32.mrf.mxu0 }
 0x449   :  { %v2545_v25 = vpop.f32.mrf.mxu0 }
 0x44b   :  { %v857_v26 = vpop.f32.mrf.mxu0 }
 0x44d   :  { %v2548_v27 = vpop.f32.mrf.mxu0 }
 0x44f   :  { %v862_v28 = vpop.f32.mrf.mxu0 }
 0x451   :  { %v2551_v29 = vpop.f32.mrf.mxu0 }
 0x453   :  { %v867_v30 = vpop.f32.mrf.mxu0 }
 0x455   :  { %v2554_v31 = vpop.f32.mrf.mxu0 }
 0x457   :  { %v872_v32 = vpop.f32.mrf.mxu0 }
 0x459   :  { %v2557_v33 = vpop.f32.mrf.mxu0 }
 0x45b   :  { %v877_v34 = vpop.f32.mrf.mxu0 }
 0x45d   :  { %v2560_v35 = vpop.f32.mrf.mxu0 }
 0x45f   :  { %v882_v36 = vpop.f32.mrf.mxu0 }
 0x461   :  { %v2563_v37 = vpop.f32.mrf.mxu0 }
 0x463   :  { %v887_v38 = vpop.f32.mrf.mxu0 }
 0x465   :  { %v2566_v39 = vpop.f32.mrf.mxu0 }
 0x467   :  { %v892_v40 = vpop.f32.mrf.mxu0 }
 0x469   :  { %v2569_v41 = vpop.f32.mrf.mxu0 }
 0x46b   :  { %v897_v42 = vpop.f32.mrf.mxu0 }
 0x46c   :  { %955 = vrot.lane.b32.xlu1 %v897_v42, %s2927_s16 }
 0x46d   :  { %v2572_v43 = vpop.f32.mrf.mxu0 }
 0x46f   :  { %v902_v44 = vpop.f32.mrf.mxu0 }
 0x470   :  { %953 = vrot.lane.b32.xlu1 %v892_v40, %s2927_s16  ;;  %957 = vrot.lane.b32.xlu0 %v902_v44, %s2927_s16 }
 0x471   :  { %v2575_v45 = vpop.f32.mrf.mxu0 }
 0x474   :  { %949 = vrot.lane.b32.xlu1 %v882_v36, %s2927_s16  ;;  %951 = vrot.lane.b32.xlu0 %v887_v38, %s2927_s16 }
 0x478   :  { %945 = vrot.lane.b32.xlu1 %v872_v32, %s2927_s16  ;;  %947 = vrot.lane.b32.xlu0 %v877_v34, %s2927_s16 }
 0x47c   :  { %941 = vrot.lane.b32.xlu1 %v862_v28, %s2927_s16  ;;  %943 = vrot.lane.b32.xlu0 %v867_v30, %s2927_s16 }
 0x480   :  { %937 = vrot.lane.b32.xlu1 %v852_v24, %s2927_s16  ;;  %939 = vrot.lane.b32.xlu0 %v857_v26, %s2927_s16 }
 0x484   :  { %933 = vrot.lane.b32.xlu1 %v842_v20, %s2927_s16  ;;  %935 = vrot.lane.b32.xlu0 %v847_v22, %s2927_s16 }
 0x488   :  { %1592 = vrot.lane.b32.xlu0 %v1554_v46, %s2927_s16  ;;  %1590 = vrot.lane.b32.xlu1 %v3437_v47, %s2927_s16 }
 0x48c   :  { %1588 = vrot.lane.b32.xlu0 %v3442_v49, %s2927_s16  ;;  %1586 = vrot.lane.b32.xlu1 %v3444_v50, %s2927_s16 }
 0x490   :  { %1584 = vrot.lane.b32.xlu0 %v3450_v52, %s2927_s16  ;;  %1582 = vrot.lane.b32.xlu1 %v3452_v53, %s2927_s16 }
 0x494   :  { %1580 = vrot.lane.b32.xlu0 %v3458_v55, %s2927_s16  ;;  %1578 = vrot.lane.b32.xlu1 %v3460_v56, %s2927_s16 }
 0x498   :  { %1576 = vrot.lane.b32.xlu0 %v3466_v58, %s2927_s16  ;;  %1574 = vrot.lane.b32.xlu1 %v3468_v59, %s2927_s16 }
 0x49c   :  { %1572 = vrot.lane.b32.xlu0 %v3474_v61, %s2927_s16  ;;  %1570 = vrot.lane.b32.xlu1 %v3476_v62, %s2927_s16 }
 0x4a0   :  { %1568 = vrot.lane.b32.xlu0 %v3482_v3, %s2927_s16 }
 0x4de   :  { %v956_v7 = vpop.permute.xlu1 %955 }
 0x4df   :  { %984 = vst.msk [vmem:[#allocation2 + $0x59] sm:$0xff] %vm972_vm8, %v956_v7 }
 0x4e2   :  { %v954_v13 = vpop.permute.xlu1 %953  ;;  %v958_v20 = vpop.permute.xlu0 %957 }
 0x4e3   :  { %983 = vst.msk [vmem:[#allocation2 + $0x51] sm:$0xff] %vm972_vm8, %v954_v13 }
 0x4e4   :  { %986 = vst.msk [vmem:[#allocation2 + $0x61] sm:$0xf] %vm985_vm9, %v958_v20 }
 0x4e6   :  { %v950_v21 = vpop.permute.xlu1 %949  ;;  %v952_v22 = vpop.permute.xlu0 %951  ;;  %v998_v23 = vld [vmem:[#allocation2 + $0x59] sm:$0xff] }
 0x4e7   :  { %981 = vst.msk [vmem:[#allocation2 + $0x41] sm:$0xff] %vm972_vm8, %v950_v21  ;;  %982 = vst.msk [vmem:[#allocation2 + $0x49] sm:$0xff] %vm972_vm8, %v952_v22  ;;  %v1102_v37 = vmul.f32 0.75, %v998_v23  ;;  %v3537_v22 = vmul.f32 0.25, %v998_v23 }
 0x4ea   :  { %v946_v25 = vpop.permute.xlu1 %945  ;;  %v948_v26 = vpop.permute.xlu0 %947  ;;  %v1011_v35 = vld [vmem:[#allocation2 + $0x58] sm:$0xff] }
 0x4eb   :  { %v3504_v24 = vld [vmem:[#allocation2 + $0x5a] sm:$0xff]  ;;  %979 = vst.msk [vmem:[#allocation2 + $0x31] sm:$0xff] %vm972_vm8, %v946_v25  ;;  %980 = vst.msk [vmem:[#allocation2 + $0x39] sm:$0xff] %vm972_vm8, %v948_v26  ;;  %v3508_v29 = vld [vmem:[#allocation2 + $0x62] sm:$0xf]  ;;  %v1089_v41 = vmul.f32 0.25, %v1011_v35 }
 0x4ec   :  { %v999_v27 = vld [vmem:[#allocation2 + $0x61] sm:$0xf]  ;;  %v3516_v36 = vld [vmem:[#allocation2 + $0x52] sm:$0xff]  ;;  %v1154_v44 = vmul.f32 0.75, %v1011_v35  ;;  %v1128_v45 = vmul.f32 0.25, %v3504_v24 }
 0x4ed   :  { %v1012_v28 = vld [vmem:[#allocation2 + $0x60] sm:$0xf]  ;;  %v1103_v31 = vmul.f32 0.75, %v999_v27  ;;  %v3510_v33 = vmul.f32 0.25, %v999_v27  ;;  %v1077_v34 = vsel %vm1064_vm10, %v999_v27, %v3508_v29  ;;  %v997_v6 = vld [vmem:[#allocation2 + $0x51] sm:$0xff]  ;;  %v3531_v7 = vadd.f32 %v1102_v37, %v1089_v41 }
 0x4ee   :  { %v1090_v30 = vmul.f32 0.25, %v1012_v28  ;;  %v1155_v32 = vmul.f32 0.75, %v1012_v28  ;;  %1750 = vst.msk [vmem:[#allocation2 + $0x61] sm:$0xf] %vm918_vm3, %v1554_v46  ;;  %v1129_v39 = vmul.f32 0.25, %v1077_v34  ;;  %v942_v42 = vpop.permute.xlu1 %941  ;;  %v944_v43 = vpop.permute.xlu0 %943  ;;  %v1010_v46 = vld [vmem:[#allocation2 + $0x50] sm:$0xff]  ;;  %v3545_v28 = vadd.f32 %v1128_v45, %v1102_v37 }
 0x4ef   :  { %1749 = vst.msk [vmem:[#allocation2 + $0x59] sm:$0xff] %vm290_vm2, %v3437_v47  ;;  %v3524_v18 = vld [vmem:[#allocation2 + $0x4a] sm:$0xff]  ;;  %v1088_v47 = vmul.f32 0.25, %v1010_v46  ;;  %v3535_v21 = vld [vmem:[#allocation2 + $0x42] sm:$0xff]  ;;  %v1101_v25 = vmul.f32 0.75, %v997_v6  ;;  %v1127_v34 = vmul.f32 0.25, %v3516_v36 }
 0x4f0   :  { %v3518_v38 = vadd.f32 %v1103_v31, %v1090_v30  ;;  %v1181_v40 = vadd.f32 %v3510_v33, %v1155_v32  ;;  %977 = vst.msk [vmem:[#allocation2 + $0x21] sm:$0xff] %vm972_vm8, %v942_v42  ;;  %978 = vst.msk [vmem:[#allocation2 + $0x29] sm:$0xff] %vm972_vm8, %v944_v43  ;;  %v3528_v14 = vadd.f32 %v1129_v39, %v1103_v31  ;;  %v996_v13 = vld [vmem:[#allocation2 + $0x49] sm:$0xff]  ;;  %v1153_v30 = vmul.f32 0.75, %v1010_v46  ;;  %v995_v31 = vld [vmem:[#allocation2 + $0x41] sm:$0xff] }
 0x4f1   :  { %1748 = vst.msk [vmem:[#allocation2 + $0x51] sm:$0xff] %vm290_vm2, %v3442_v49  ;;  %v1009_v20 = vld [vmem:[#allocation2 + $0x48] sm:$0xff]  ;;  %v1180_v49 = vadd.f32 %v3537_v22, %v1154_v44  ;;  %v1100_v39 = vmul.f32 0.75, %v996_v13  ;;  %v3558_v42 = vmul.f32 0.25, %v997_v6  ;;  %v3566_v46 = vmul.f32 0.25, %v996_v13 }
 0x4f2   :  { %1265 = vmatprep.subr.mxu1 %v3518_v38  ;;  %1747 = vst.msk [vmem:[#allocation2 + $0x49] sm:$0xff] %vm290_vm2, %v3444_v50  ;;  %2577 = vmatpush3.xpose.msra.mxu0 %v3528_v14  ;;  %v938_v26 = vpop.permute.xlu1 %937  ;;  %v940_v27 = vpop.permute.xlu0 %939  ;;  %v1008_v23 = vld [vmem:[#allocation2 + $0x40] sm:$0xff]  ;;  %v3551_v50 = vadd.f32 %v1101_v25, %v1088_v47  ;;  %v1087_v35 = vmul.f32 0.25, %v1009_v20  ;;  %v3556_v41 = vld [vmem:[#allocation2 + $0x32] sm:$0xff]  ;;  %v1152_v45 = vmul.f32 0.75, %v1009_v20  ;;  %v1126_v47 = vmul.f32 0.25, %v3524_v18 }
 0x4f3   :  { %1266 = vmatpush1.xpose.msra.mxu1 %v1181_v40  ;;  %2578 = vmatprep.subr.mxu0 %v4321_v16  ;;  %v3547_v32 = vld [vmem:[#allocation2 + $0x3a] sm:$0xff]  ;;  %975 = vst.msk [vmem:[#allocation2 + $0x11] sm:$0xff] %vm972_vm8, %v938_v26  ;;  %976 = vst.msk [vmem:[#allocation2 + $0x19] sm:$0xff] %vm972_vm8, %v940_v27  ;;  %v3569_v6 = vld [vmem:[#allocation2 + $0x31] sm:$0xff]  ;;  %v1086_v17 = vmul.f32 0.25, %v1008_v23  ;;  %v1123_v54 = vmul.f32 0.25, %v3556_v41 }
 0x4f4   :  { %1267 = vmatprep.subr.mxu1 %v3531_v7  ;;  %1746 = vst.msk [vmem:[#allocation2 + $0x41] sm:$0xff] %vm290_vm2, %v3450_v52  ;;  %v994_v37 = vld [vmem:[#allocation2 + $0x39] sm:$0xff]  ;;  %v1179_v52 = vadd.f32 %v3558_v42, %v1153_v30  ;;  %v1124_v19 = vmul.f32 0.25, %v3547_v32 }
 0x4f5   :  { %v1007_v40 = vld [vmem:[#allocation2 + $0x38] sm:$0xff]  ;;  %v1098_v15 = vmul.f32 0.75, %v994_v37 }
 0x4f6   :  { %1745 = vst.msk [vmem:[#allocation2 + $0x39] sm:$0xff] %vm290_vm2, %v3452_v53  ;;  %2579 = vmatpush3.xpose.msra.mxu0 %v3545_v28  ;;  %v934_v43 = vpop.permute.xlu1 %933  ;;  %v936_v44 = vpop.permute.xlu0 %935  ;;  %v3575_v53 = vadd.f32 %v1127_v34, %v1101_v25  ;;  %v1099_v25 = vmul.f32 0.75, %v995_v31  ;;  %v1178_v34 = vadd.f32 %v3566_v46, %v1152_v45  ;;  %v1085_v0 = vmul.f32 0.25, %v1007_v40 }
 0x4f7   :  { %1268 = vmatpush1.xpose.msra.mxu1 %v1180_v49  ;;  %2580 = vmatprep.subr.mxu0 %v4321_v16  ;;  %v1006_v26 = vld [vmem:[#allocation2 + $0x30] sm:$0xff]  ;;  %973 = vst.msk [vmem:[#allocation2 + $0x1] sm:$0xff] %vm972_vm8, %v934_v43  ;;  %974 = vst.msk [vmem:[#allocation2 + $0x9] sm:$0xff] %vm972_vm8, %v936_v44  ;;  %v3577_v49 = vadd.f32 %v1100_v39, %v1087_v35  ;;  %v3583_v20 = vld [vmem:[#allocation2 + $0x28] sm:$0xff]  ;;  %v1151_v35 = vmul.f32 0.75, %v1008_v23  ;;  %v3612_v45 = vmul.f32 0.25, %v995_v31 }
 0x4f8   :  { %1269 = vmatprep.subr.mxu1 %v3551_v50  ;;  %v3571_v27 = vld [vmem:[#allocation2 + $0x2a] sm:$0xff]  ;;  %v3585_v30 = vld [vmem:[#allocation2 + $0x22] sm:$0xff]  ;;  %v3601_v8 = vadd.f32 %v1099_v25, %v1086_v17  ;;  %v3631_v63 = vadd.f32 %v1098_v15, %v1085_v0  ;;  %v1084_v60 = vmul.f32 0.25, %v1006_v26  ;;  %v1097_v0 = vmul.f32 0.75, %v3569_v6 }
 0x4f9   :  { %1744 = vst.msk [vmem:[#allocation2 + $0x31] sm:$0xff] %vm290_vm2, %v3458_v55  ;;  %v3581_v13 = vld [vmem:[#allocation2 + $0x29] sm:$0xff]  ;;  %v3593_v55 = vadd.f32 %v1126_v47, %v1100_v39  ;;  %v3595_v43 = vld [vmem:[#allocation2 + $0x21] sm:$0xff]  ;;  %v1177_v17 = vadd.f32 %v3612_v45, %v1151_v35  ;;  %v3620_v47 = vmul.f32 0.25, %v994_v37  ;;  %v1083_v51 = vmul.f32 0.25, %v3583_v20 }
 0x4fa   :  { %1743 = vst.msk [vmem:[#allocation2 + $0x29] sm:$0xff] %vm290_vm2, %v3460_v56  ;;  %2581 = vmatpush3.xpose.msra.mxu0 %v3575_v53  ;;  %v3597_v44 = vld [vmem:[#allocation2 + $0x20] sm:$0xff]  ;;  %v1125_v56 = vmul.f32 0.25, %v3535_v21  ;;  %v3608_v39 = vld [vmem:[#allocation2 + $0x18] sm:$0xff]  ;;  %4338 = vst [vmem:[#allocation29_spill] sm:$0xff] %v3631_v63  ;;  %v1096_v48 = vmul.f32 0.75, %v3581_v13 }
 0x4fb   :  { %1270 = vmatpush1.xpose.msra.mxu1 %v1179_v52  ;;  %2582 = vmatprep.subr.mxu0 %v4321_v16  ;;  %v3599_v52 = vld [vmem:[#allocation2 + $0x1a] sm:$0xff]  ;;  %v3610_v23 = vld [vmem:[#allocation2 + $0x12] sm:$0xff] }
 0x4fc   :  { %1271 = vmatprep.subr.mxu1 %v3577_v49  ;;  %1742 = vst.msk [vmem:[#allocation2 + $0x21] sm:$0xff] %vm290_vm2, %v3466_v58  ;;  %v3606_v4 = vld [vmem:[#allocation2 + $0x19] sm:$0xff]  ;;  %4337 = vst [vmem:[#allocation28_spill] sm:$0xff] %v3610_v23  ;;  %v1150_v58 = vmul.f32 0.75, %v1007_v40  ;;  %v3623_v9 = vld [vmem:[#allocation2 + $0x11] sm:$0xff] }
 0x4fd   :  { %1741 = vst.msk [vmem:[#allocation2 + $0x19] sm:$0xff] %vm290_vm2, %v3468_v59  ;;  %v3629_v59 = vadd.f32 %v1125_v56, %v1099_v25  ;;  %v3654_v56 = vadd.f32 %v1124_v19, %v1098_v15  ;;  %v3670_v15 = vmul.f32 0.25, %v3581_v13 }
 0x4fe   :  { %2583 = vmatpush3.xpose.msra.mxu0 %v3593_v55  ;;  %v3625_v31 = vld [vmem:[#allocation2 + $0x10] sm:$0xff]  ;;  %v3637_v37 = vld [vmem:[#allocation2 + $0x8] sm:$0xff]  ;;  %v3645_v25 = vld [vmem:[#allocation2] sm:$0xff] }
 0x4ff   :  { %1272 = vmatpush1.xpose.msra.mxu1 %v1178_v34  ;;  %2584 = vmatprep.subr.mxu0 %v4321_v16  ;;  %v3627_v34 = vld [vmem:[#allocation2 + $0xa] sm:$0xff]  ;;  %v3639_v40 = vld [vmem:[#allocation2 + $0x2] sm:$0xff] }
 0x500   :  { %1273 = vmatprep.subr.mxu1 %v3601_v8  ;;  %1740 = vst.msk [vmem:[#allocation2 + $0x11] sm:$0xff] %vm290_vm2, %v3474_v61  ;;  %v3635_v35 = vld [vmem:[#allocation2 + $0x9] sm:$0xff]  ;;  %v3643_v57 = vld [vmem:[#allocation2 + $0x1] sm:$0xff]  ;;  %v1176_v61 = vadd.f32 %v3620_v47, %v1150_v58  ;;  %v3675_v58 = vadd.f32 %v1096_v48, %v1083_v51  ;;  %v1121_v51 = vmul.f32 0.25, %v3585_v30 }
 0x501   :  { %1739 = vst.msk [vmem:[#allocation2 + $0x9] sm:$0xff] %vm290_vm2, %v3476_v62  ;;  %1738 = vst.msk [vmem:[#allocation2 + $0x1] sm:$0xff] %vm290_vm2, %v3482_v3  ;;  %v1149_v62 = vmul.f32 0.75, %v1006_v26  ;;  %v1122_v3 = vmul.f32 0.25, %v3571_v27  ;;  %v3673_v26 = vadd.f32 %v1123_v54, %v1097_v0  ;;  %v1147_v54 = vmul.f32 0.75, %v3597_v44 }
 0x502   :  { %2585 = vmatpush3.xpose.msra.mxu0 %v3629_v59  ;;  %4339 = vst [vmem:[#allocation30_spill] sm:$0xff] %v3675_v58  ;;  %vm1026_vm2 = vcmp.eq.s32.totalorder %v3144_v10, 0 }
 0x503   :  { %1274 = vmatpush1.xpose.msra.mxu1 %v1177_v17  ;;  %2586 = vmatprep.subr.mxu0 %v4321_v16  ;;  %v3656_v17 = vadd.f32 %v1097_v0, %v1084_v60  ;;  %v1148_v60 = vmul.f32 0.75, %v3583_v20  ;;  %v3683_v20 = vadd.f32 %v1122_v3, %v1096_v48  ;;  %vm3762_vm3 = vmneg %vm1026_vm2 }
 0x504   :  { %1275 = vmatprep.subr.mxu1 %v3631_v63  ;;  %v3662_v63 = vmul.f32 0.25, %v3569_v6  ;;  %v1082_v6 = vmul.f32 0.25, %v3597_v44  ;;  %v1146_v44 = vmul.f32 0.75, %v3608_v39 }
 0x505   :  { %v1174_v13 = vadd.f32 %v3670_v15, %v1148_v60  ;;  %v3700_v60 = vmul.f32 0.25, %v3606_v4 }
 0x506   :  { %2587 = vmatpush3.xpose.msra.mxu0 %v3654_v56  ;;  %v1175_v19 = vadd.f32 %v3662_v63, %v1149_v62  ;;  %v1081_v62 = vmul.f32 0.25, %v3608_v39  ;;  %v1145_v39 = vmul.f32 0.75, %v3625_v31 }
 0x507   :  { %1276 = vmatpush1.xpose.msra.mxu1 %v1176_v61  ;;  %2588 = vmatprep.subr.mxu0 %v4321_v16  ;;  %v1095_v61 = vmul.f32 0.75, %v3595_v43  ;;  %4341 = vst [vmem:[#allocation32_spill] sm:$0xff] %v3700_v60 }
 0x508   :  { %1277 = vmatprep.subr.mxu1 %v3656_v17 }
 0x509   :  { %v3686_v0 = vadd.f32 %v1095_v61, %v1082_v6  ;;  %v3702_v3 = vadd.f32 %v1121_v51, %v1095_v61  ;;  %v1119_v61 = vmul.f32 0.25, %v3610_v23 }
 0x50a   :  { %2589 = vmatpush3.xpose.msra.mxu0 %v3673_v26 }
 0x50b   :  { %1278 = vmatpush1.xpose.msra.mxu1 %v1175_v19  ;;  %2590 = vmatprep.subr.mxu0 %v4321_v16  ;;  %4340 = vst [vmem:[#allocation31_spill] sm:$0xff] %v3686_v0  ;;  %v1094_v19 = vmul.f32 0.75, %v3606_v4  ;;  %v1172_v4 = vadd.f32 %v3700_v60, %v1146_v44  ;;  %v1039_v44 = vsel %vm1026_vm2, %v3643_v57, %v3645_v25  ;;  %v1091_v60 = vmul.f32 0.75, %v3643_v57 }
 0x50c   :  { %1279 = vmatprep.subr.mxu1 %v3675_v58  ;;  %v3692_v58 = vmul.f32 0.25, %v3595_v43  ;;  %v1120_v43 = vmul.f32 0.25, %v3599_v52  ;;  %v1078_v23 = vmul.f32 0.25, %v1039_v44  ;;  %v1240_v44 = vcombine.high %v4336_v5, %v4336_v5 }
 0x50d   :  { %v3704_v6 = vadd.f32 %v1094_v19, %v1081_v62 }
 0x50e   :  { %2591 = vmatpush3.xpose.msra.mxu0 %v3683_v20  ;;  %v1173_v48 = vadd.f32 %v3692_v58, %v1147_v54  ;;  %v1093_v54 = vmul.f32 0.75, %v3623_v9  ;;  %v3716_v51 = vadd.f32 %v1120_v43, %v1094_v19  ;;  %v1144_v43 = vmul.f32 0.75, %v3637_v37 }
 0x50f   :  { %1280 = vmatpush1.xpose.msra.mxu1 %v1174_v13  ;;  %2592 = vmatprep.subr.mxu0 %v4321_v16  ;;  %4342 = vst [vmem:[#allocation33_spill] sm:$0xff] %v3704_v6  ;;  %v1080_v13 = vmul.f32 0.25, %v3625_v31  ;;  %v3774_v5 = vrot.slane %v1240_v44, %v3487_v11  ;;  %v4361_v44 = vld [vmem:[#allocation23_spill] sm:$0xff] }
 0x510   :  { %1281 = vmatprep.subr.mxu1 %v3686_v0  ;;  %v3723_v0 = vmul.f32 0.25, %v3623_v9  ;;  %v3733_v19 = vadd.f32 %v1119_v61, %v1093_v54  ;;  %v3737_v9 = vmul.f32 0.25, %v3635_v35  ;;  %v3753_v61 = vadd.f32 %v1091_v60, %v1078_v23 }
 0x511   :  { %v3718_v62 = vadd.f32 %v1093_v54, %v1080_v13  ;;  %v1207_v23 = vmul.f32 0.75, %v3508_v29 }
 0x512   :  { %2593 = vmatpush3.xpose.msra.mxu0 %v3702_v3  ;;  %v1171_v31 = vadd.f32 %v3723_v0, %v1145_v39  ;;  %v1170_v54 = vadd.f32 %v3737_v9, %v1144_v43 }
 0x513   :  { %1282 = vmatpush1.xpose.msra.mxu1 %v1173_v48  ;;  %2594 = vmatprep.subr.mxu0 %v4321_v16  ;;  %v1079_v48 = vmul.f32 0.25, %v3637_v37  ;;  %v1143_v37 = vmul.f32 0.75, %v3645_v25  ;;  %v1220_v29 = vadd.f32 %v1207_v23, %v3510_v33  ;;  %v1205_v33 = vmul.f32 0.75, %v3516_v36  ;;  %v4363_v23 = vld [vmem:[#allocation25_spill] sm:$0xff] }
 0x514   :  { %1283 = vmatprep.subr.mxu1 %v3704_v6  ;;  %v1092_v6 = vmul.f32 0.75, %v3635_v35  ;;  %v3749_v35 = vmul.f32 0.25, %v3643_v57 }
 0x516   :  { %2595 = vmatpush3.xpose.msra.mxu0 %v3716_v51  ;;  %v3739_v13 = vadd.f32 %v1092_v6, %v1079_v48  ;;  %v1117_v48 = vmul.f32 0.25, %v3639_v40  ;;  %v1169_v57 = vadd.f32 %v3749_v35, %v1143_v37  ;;  %v4356_v37 = vld [vmem:[#allocation18_spill] sm:$0xff] }
 0x517   :  { %1284 = vmatpush1.xpose.msra.mxu1 %v1172_v4  ;;  %2596 = vmatprep.subr.mxu0 %v4321_v16  ;;  %v1118_v4 = vmul.f32 0.25, %v3627_v34 }
 0x518   :  { %1285 = vmatprep.subr.mxu1 %v3718_v62 }
 0x519   :  { %v3751_v39 = vadd.f32 %v1118_v4, %v1092_v6  ;;  %v3769_v6 = vadd.f32 %v1117_v48, %v1091_v60  ;;  %v1206_v60 = vmul.f32 0.75, %v3504_v24  ;;  %v1218_v24 = vadd.f32 %v1205_v33, %v3558_v42  ;;  %v4348_v42 = vld [vmem:[#allocation30_spill] sm:$0xff]  ;;  %v4354_v4 = vld [vmem:[#allocation16_spill] sm:$0xff] }
 0x51a   :  { %2597 = vmatpush3.xpose.msra.mxu0 %v3733_v19  ;;  %v4360_v48 = vld [vmem:[#allocation22_spill] sm:$0xff]  ;;  %v2929_v33 = vmov 0  }
 0x51b   :  { %1286 = vmatpush1.xpose.msra.mxu1 %v1171_v31  ;;  %2598 = vmatprep.subr.mxu0 %v4321_v16  ;;  %v1219_v11 = vadd.f32 %v1206_v60, %v3537_v22  ;;  %v1201_v22 = vmul.f32 0.75, %v3556_v41  ;;  %v1199_v41 = vmul.f32 0.75, %v3585_v30  ;;  %v4351_v30 = vld [vmem:[#allocation28_spill] sm:$0xff] }
 0x51c   :  { %1287 = vmatprep.subr.mxu1 %v3739_v13  ;;  %2805 = vset.pattern.permute.xlu0 %v2929_v33 }
 0x51e   :  { %2599 = vmatpush3.xpose.msra.mxu0 %v3751_v39 }
 0x51f   :  { %1288 = vmatpush1.xpose.msra.mxu1 %v1170_v54  ;;  %2600 = vmatprep.subr.mxu0 %v4321_v16  ;;  %v4355_v54 = vld [vmem:[#allocation17_spill] sm:$0xff] }
 0x520   :  { %1289 = vmatprep.subr.mxu1 %v3753_v61 }
 0x522   :  { %2601 = vmatpush3.xpose.msra.mxu0 %v3769_v6 }
 0x523   :  { %2364 = vmatpush1.xpose.msk.msra.mxu1 %vm3762_vm3, %v1169_v57  ;;  %2605 = vmatprep.subr.mxu0 %v4321_v16  ;;  %v4362_v57 = vld [vmem:[#allocation24_spill] sm:$0xff] }
 0x524   :  { %1407 = vmatprep.subr.mxu1 %v3528_v14  ;;  %v1203_v14 = vmul.f32 0.75, %v3535_v21 }
 0x525   :  { %2603 = vmatmul.mubr.f32.vlgmr.msra.gmra.mxu0 %v3774_v5 }
 0x526   :  { %1324 = vmatmul.mubr.f32.vlgmr.msra.gmra.mxu1 %v3491_v1  ;;  %2606 = vmatpush3.xpose.msk.msra.mxu0 %vm3781_vm11, %v1220_v29  ;;  %v4365_v29 = vld [vmem:[#allocation27_spill] sm:$0xff] }
 0x527   :  { %1408 = vmatpush1.xpose.msra.mxu1 %v3518_v38  ;;  %2607 = vmatprep.subr.mxu0 %v4321_v16  ;;  %v1204_v38 = vmul.f32 0.75, %v3524_v18  ;;  %v1216_v18 = vadd.f32 %v1203_v14, %v3612_v45  ;;  %v4352_v45 = vld [vmem:[#allocation33_spill] sm:$0xff] }
 0x528   :  { %1409 = vmatprep.subr.mxu1 %v3545_v28  ;;  %1465 = vmatprep.mubr.f32.mxu1 %v3495_v2  ;;  %v4347_v28 = vld [vmem:[#allocation29_spill] sm:$0xff] }
 0x529   :  { %2631 = vmatprep.mubr.msk.f32.mxu0 %vm2925_vm0, %v4321_v16  ;;  %v1217_v36 = vadd.f32 %v1204_v38, %v3566_v46  ;;  %v1198_v46 = vmul.f32 0.75, %v3599_v52 }
 0x52a   :  { %2608 = vmatpush3.xpose.msra.mxu0 %v1219_v11 }
 0x52b   :  { %1410 = vmatpush1.xpose.msra.mxu1 %v3531_v7  ;;  %2609 = vmatprep.subr.mxu0 %v4321_v16  ;;  %v1202_v7 = vmul.f32 0.75, %v3547_v32  ;;  %v1214_v32 = vadd.f32 %v1201_v22, %v3662_v63  ;;  %v1212_v63 = vadd.f32 %v1199_v41, %v3692_v58 }
 0x52c   :  { %1411 = vmatprep.subr.mxu1 %v3575_v53  ;;  %v4350_v53 = vld [vmem:[#allocation32_spill] sm:$0xff] }
 0x52d   :  { %v1215_v21 = vadd.f32 %v1202_v7, %v3620_v47  ;;  %v1593_v47 = vpop.permute.xlu0 %1592 }
 0x52e   :  { %2610 = vmatpush3.xpose.msra.mxu0 %v1218_v24 }
 0x52f   :  { %1412 = vmatpush1.xpose.msra.mxu1 %v3551_v50  ;;  %2611 = vmatprep.subr.mxu0 %v4321_v16 }
 0x530   :  { %1413 = vmatprep.subr.mxu1 %v3593_v55  ;;  %v1197_v55 = vmul.f32 0.75, %v4351_v30 }
 0x532   :  { %2612 = vmatpush3.xpose.msra.mxu0 %v1217_v36  ;;  %v1210_v52 = vadd.f32 %v1197_v55, %v3723_v0 }
 0x533   :  { %1414 = vmatpush1.xpose.msra.mxu1 %v3577_v49  ;;  %2613 = vmatprep.subr.mxu0 %v4321_v16  ;;  %v1211_v49 = vadd.f32 %v1198_v46, %v4350_v53 }
 0x534   :  { %1415 = vmatprep.subr.mxu1 %v3629_v59  ;;  %v1196_v59 = vmul.f32 0.75, %v3627_v34 }
 0x536   :  { %2614 = vmatpush3.xpose.msra.mxu0 %v1216_v18 }
 0x537   :  { %1416 = vmatpush1.xpose.msra.mxu1 %v3601_v8  ;;  %2615 = vmatprep.subr.mxu0 %v4321_v16  ;;  %v1200_v8 = vmul.f32 0.75, %v3571_v27  ;;  %v4349_v27 = vld [vmem:[#allocation31_spill] sm:$0xff] }
 0x538   :  { %1417 = vmatprep.subr.mxu1 %v3654_v56  ;;  %v1591_v56 = vpop.permute.xlu1 %1590 }
 0x539   :  { %v1213_v50 = vadd.f32 %v1200_v8, %v3670_v15  ;;  %v1195_v15 = vmul.f32 0.75, %v3639_v40 }
 0x53a   :  { %2616 = vmatpush3.xpose.msra.mxu0 %v1215_v21 }
 0x53b   :  { %1418 = vmatpush1.xpose.msra.mxu1 %v4347_v28  ;;  %2617 = vmatprep.subr.mxu0 %v4321_v16  ;;  %v1208_v34 = vadd.f32 %v1195_v15, %v3749_v35  ;;  %v4357_v35 = vld [vmem:[#allocation19_spill] sm:$0xff] }
 0x53c   :  { %1419 = vmatprep.subr.mxu1 %v3673_v26  ;;  %v1589_v26 = vpop.permute.xlu0 %1588  ;;  %v1587_v58 = vpop.permute.xlu1 %1586 }
 0x53e   :  { %2618 = vmatpush3.xpose.msra.mxu0 %v1214_v32 }
 0x53f   :  { %1420 = vmatpush1.xpose.msra.mxu1 %v3656_v17  ;;  %2619 = vmatprep.subr.mxu0 %v4321_v16  ;;  %v1209_v17 = vadd.f32 %v1196_v59, %v3737_v9 }
 0x540   :  { %1421 = vmatprep.subr.mxu1 %v3683_v20  ;;  %v1585_v20 = vpop.permute.xlu0 %1584  ;;  %v1583_v40 = vpop.permute.xlu1 %1582 }
 0x542   :  { %2620 = vmatpush3.xpose.msra.mxu0 %v1213_v50 }
 0x543   :  { %1422 = vmatpush1.xpose.msra.mxu1 %v4348_v42  ;;  %2621 = vmatprep.subr.mxu0 %v4321_v16 }
 0x544   :  { %1423 = vmatprep.subr.mxu1 %v3702_v3  ;;  %v1581_v0 = vpop.permute.xlu0 %1580  ;;  %v1579_v3 = vpop.permute.xlu1 %1578 }
 0x546   :  { %2622 = vmatpush3.xpose.msra.mxu0 %v1212_v63 }
 0x547   :  { %1424 = vmatpush1.xpose.msra.mxu1 %v4349_v27  ;;  %2623 = vmatprep.subr.mxu0 %v4321_v16 }
 0x548   :  { %1425 = vmatprep.subr.mxu1 %v3716_v51  ;;  %v1577_v51 = vpop.permute.xlu0 %1576 }
 0x54a   :  { %2624 = vmatpush3.xpose.msra.mxu0 %v1211_v49 }
 0x54b   :  { %1426 = vmatpush1.xpose.msra.mxu1 %v4352_v45  ;;  %2625 = vmatprep.subr.mxu0 %v4321_v16 }
 0x54c   :  { %1427 = vmatprep.subr.mxu1 %v3733_v19  ;;  %v1573_v19 = vpop.permute.xlu0 %1572 }
 0x54e   :  { %2626 = vmatpush3.xpose.msra.mxu0 %v1210_v52 }
 0x54f   :  { %1428 = vmatpush1.xpose.msra.mxu1 %v3718_v62  ;;  %2627 = vmatprep.subr.mxu0 %v4321_v16  ;;  %v1575_v62 = vpop.permute.xlu1 %1574 }
 0x550   :  { %1429 = vmatprep.subr.mxu1 %v3751_v39  ;;  %v1569_v9 = vpop.permute.xlu0 %1568  ;;  %v4358_v39 = vld [vmem:[#allocation20_spill] sm:$0xff] }
 0x552   :  { %2628 = vmatpush3.xpose.msra.mxu0 %v1209_v17 }
 0x553   :  { %1430 = vmatpush1.xpose.msra.mxu1 %v3739_v13  ;;  %2629 = vmatprep.subr.mxu0 %v4321_v16  ;;  %v1571_v43 = vpop.permute.xlu1 %1570  ;;  %v4353_v13 = vld [vmem:[#allocation15_spill] sm:$0xff] }
 0x554   :  { %1431 = vmatprep.subr.mxu1 %v3769_v6  ;;  %v4364_v6 = vld [vmem:[#allocation26_spill] sm:$0xff] }
 0x556   :  { %2630 = vmatpush3.xpose.msra.mxu0 %v1208_v34 }
 0x557   :  { %1432 = vmatpush1.xpose.msra.mxu1 %v3753_v61  ;;  %v4359_v61 = vld [vmem:[#allocation21_spill] sm:$0xff] }
 0x558   :  { %2634 = vmatprep.subr.mxu1 %v4321_v16 }
 0x559   :  { %2632 = vmatmul.mubr.f32.vlgmr.msra.gmra.mxu0 %v3774_v5 }
 0x55a   :  { %1466 = vmatmul.mubr.f32.vlgmr.msra.gmra.mxu1 %v3491_v1  ;;  %2101 = vmatprep.mubr.f32.mxu0 %v3495_v2 }
 0x55b   :  { %2635 = vmatpush3.msk.msra.mxu1 %vm773_vm4, %v1593_v47  ;;  %2660 = vmatprep.mubr.msk.f32.mxu1 %vm2925_vm0, %v4321_v16  ;;  %vm1399_vm4 = vcmask 812032  }
 0x55c   :  { %2636 = vmatprep.subr.mxu1 %v4321_v16 }
 0x55d   :  { %2637 = vmatpush3.msra.mxu1 %v1591_v56 }
 0x55e   :  { %2638 = vmatprep.subr.mxu1 %v4321_v16 }
 0x55f   :  { %2639 = vmatpush3.msra.mxu1 %v1589_v26 }
 0x560   :  { %2640 = vmatprep.subr.mxu1 %v4321_v16 }
 0x561   :  { %2641 = vmatpush3.msra.mxu1 %v1587_v58  ;;  %v4366_v58 = vld [vmem:[#allocation37_spill] sm:$0xff] }
 0x562   :  { %2642 = vmatprep.subr.mxu1 %v4321_v16 }
 0x563   :  { %2643 = vmatpush3.msra.mxu1 %v1585_v20 }
 0x564   :  { %2644 = vmatprep.subr.mxu1 %v4321_v16 }
 0x565   :  { %2645 = vmatpush3.msra.mxu1 %v1583_v40 }
 0x566   :  { %2646 = vmatprep.subr.mxu1 %v4321_v16 }
 0x567   :  { %2647 = vmatpush3.msra.mxu1 %v1581_v0 }
 0x568   :  { %2648 = vmatprep.subr.mxu1 %v4321_v16 }
 0x569   :  { %2649 = vmatpush3.msra.mxu1 %v1579_v3 }
 0x56a   :  { %2650 = vmatprep.subr.mxu1 %v4321_v16 }
 0x56b   :  { %2651 = vmatpush3.msra.mxu1 %v1577_v51 }
 0x56c   :  { %2652 = vmatprep.subr.mxu1 %v4321_v16 }
 0x56d   :  { %2653 = vmatpush3.msra.mxu1 %v1575_v62 }
 0x56e   :  { %2654 = vmatprep.subr.mxu1 %v4321_v16 }
 0x56f   :  { %2655 = vmatpush3.msra.mxu1 %v1573_v19 }
 0x570   :  { %2656 = vmatprep.subr.mxu1 %v4321_v16 }
 0x571   :  { %2657 = vmatpush3.msra.mxu1 %v1571_v43 }
 0x572   :  { %2658 = vmatprep.subr.mxu1 %v4321_v16 }
 0x573   :  { %2659 = vmatpush3.msra.mxu1 %v1569_v9 }
 0x574   :  { %2661 = vmatmul.mubr.msk.f32.vlgmr.msra.gmra.mxu1 %vm733_vm6, %v4353_v13  ;;  %2699 = vmatprep.subr.mxu1 %v4321_v16 }
 0x575   :  { %2663 = vmatprep.mubr.msk.f32.mxu1 %vm2925_vm0, %v4321_v16 }
 0x578   :  { %2664 = vmatmul.mubr.msk.f32.gmra.mxu1 %vm733_vm6, %v4354_v4 }
 0x579   :  { %2666 = vmatprep.mubr.msk.f32.mxu1 %vm2925_vm0, %v4321_v16 }
 0x57c   :  { %2667 = vmatmul.mubr.msk.f32.gmra.mxu1 %vm733_vm6, %v4355_v54 }
 0x57d   :  { %2669 = vmatprep.mubr.msk.f32.mxu1 %vm2925_vm0, %v4321_v16 }
 0x580   :  { %2670 = vmatmul.mubr.msk.f32.gmra.mxu1 %vm733_vm6, %v4356_v37 }
 0x581   :  { %2672 = vmatprep.mubr.msk.f32.mxu1 %vm2925_vm0, %v4321_v16 }
 0x584   :  { %2673 = vmatmul.mubr.msk.f32.gmra.mxu1 %vm733_vm6, %v4357_v35 }
 0x585   :  { %2675 = vmatprep.mubr.msk.f32.mxu1 %vm2925_vm0, %v4321_v16 }
 0x588   :  { %2676 = vmatmul.mubr.msk.f32.gmra.mxu1 %vm733_vm6, %v4358_v39 }
 0x589   :  { %2678 = vmatprep.mubr.msk.f32.mxu1 %vm2925_vm0, %v4321_v16 }
 0x58c   :  { %2679 = vmatmul.mubr.msk.f32.gmra.mxu1 %vm733_vm6, %v4359_v61 }
 0x58d   :  { %2681 = vmatprep.mubr.msk.f32.mxu1 %vm2925_vm0, %v4321_v16 }
 0x590   :  { %2682 = vmatmul.mubr.msk.f32.gmra.mxu1 %vm733_vm6, %v4360_v48 }
 0x591   :  { %2684 = vmatprep.mubr.msk.f32.mxu1 %vm2925_vm0, %v4321_v16 }
 0x594   :  { %2685 = vmatmul.mubr.msk.f32.gmra.mxu1 %vm733_vm6, %v4361_v44 }
 0x595   :  { %2687 = vmatprep.mubr.msk.f32.mxu1 %vm2925_vm0, %v4321_v16 }
 0x598   :  { %2688 = vmatmul.mubr.msk.f32.gmra.mxu1 %vm733_vm6, %v4362_v57 }
 0x599   :  { %2690 = vmatprep.mubr.msk.f32.mxu1 %vm2925_vm0, %v4321_v16 }
 0x59c   :  { %2691 = vmatmul.mubr.msk.f32.gmra.mxu1 %vm733_vm6, %v4363_v23 }
 0x59d   :  { %2693 = vmatprep.mubr.msk.f32.mxu1 %vm2925_vm0, %v4321_v16 }
 0x5a0   :  { %2694 = vmatmul.mubr.msk.f32.gmra.mxu1 %vm733_vm6, %v4364_v6 }
 0x5a1   :  { %2696 = vmatprep.mubr.msk.f32.mxu1 %vm2925_vm0, %v4321_v16 }
 0x5a4   :  { %2697 = vmatmul.mubr.msk.f32.gmra.mxu1 %vm733_vm6, %v4365_v29 }
 0x5a5   :  { %2725 = vmatprep.mubr.msk.f32.mxu1 %vm2925_vm0, %v4321_v16 }
 0x5e5   :  { %v3941_v26 = vpop.f32.mrf.mxu0 }
 0x5e6   :  { %v3926_v60 = vpop.f32.mrf.mxu1 }
 0x5e7   :  { %v2604_v34 = vpop.f32.mrf.mxu0 }
 0x5e8   :  { %v1327_v11 = vpop.f32.mrf.mxu1 }
 0x619   :  { %v3946_v20 = vpop.f32.mrf.mxu0 }
 0x61a   :  { %v3928_v24 = vpop.f32.mrf.mxu1 }
 0x61b   :  { %v2633_v40 = vpop.f32.mrf.mxu0 }
 0x61c   :  { %v1469_v38 = vpop.f32.mrf.mxu1 }
 0x634   :  { %v1674_v36 = vpop.f32.mrf.mxu1 }
 0x636   :  { %v2662_v14 = vpop.f32.mrf.mxu1 }
 0x638   :  { %v1679_v18 = vpop.f32.mrf.mxu1 }
 0x63a   :  { %v2665_v7 = vpop.f32.mrf.mxu1 }
 0x63c   :  { %v1684_v21 = vpop.f32.mrf.mxu1 }
 0x63e   :  { %v2668_v22 = vpop.f32.mrf.mxu1 }
 0x640   :  { %v1689_v28 = vpop.f32.mrf.mxu1 }
 0x642   :  { %v2671_v32 = vpop.f32.mrf.mxu1 }
 0x644   :  { %v1694_v8 = vpop.f32.mrf.mxu1 }
 0x646   :  { %v2674_v50 = vpop.f32.mrf.mxu1 }
 0x648   :  { %v1699_v41 = vpop.f32.mrf.mxu1 }
 0x64a   :  { %v2677_v42 = vpop.f32.mrf.mxu1 }
 0x64c   :  { %v1704_v63 = vpop.f32.mrf.mxu1 }
 0x64e   :  { %v2680_v46 = vpop.f32.mrf.mxu1 }
 0x650   :  { %v1709_v27 = vpop.f32.mrf.mxu1 }
 0x652   :  { %v2683_v53 = vpop.f32.mrf.mxu1 }
 0x654   :  { %v1714_v49 = vpop.f32.mrf.mxu1 }
 0x656   :  { %v2686_v30 = vpop.f32.mrf.mxu1 }
 0x658   :  { %v1719_v55 = vpop.f32.mrf.mxu1 }
 0x65a   :  { %v2689_v45 = vpop.f32.mrf.mxu1 }
 0x65c   :  { %v1724_v47 = vpop.f32.mrf.mxu1 }
 0x65e   :  { %v2692_v52 = vpop.f32.mrf.mxu1 }
 0x660   :  { %v1729_v59 = vpop.f32.mrf.mxu1 }
 0x661   :  { %1786 = vrot.lane.b32.xlu1 %v1729_v59, %s2927_s16 }
 0x662   :  { %v2695_v56 = vpop.f32.mrf.mxu1 }
 0x664   :  { %v1734_v17 = vpop.f32.mrf.mxu1 }
 0x665   :  { %1784 = vrot.lane.b32.xlu1 %v1724_v47, %s2927_s16  ;;  %1788 = vrot.lane.b32.xlu0 %v1734_v17, %s2927_s16 }
 0x666   :  { %v2698_v15 = vpop.f32.mrf.mxu1 }
 0x669   :  { %1780 = vrot.lane.b32.xlu1 %v1714_v49, %s2927_s16  ;;  %1782 = vrot.lane.b32.xlu0 %v1719_v55, %s2927_s16 }
 0x66d   :  { %1776 = vrot.lane.b32.xlu1 %v1704_v63, %s2927_s16  ;;  %1778 = vrot.lane.b32.xlu0 %v1709_v27, %s2927_s16 }
 0x671   :  { %1772 = vrot.lane.b32.xlu1 %v1694_v8, %s2927_s16  ;;  %1774 = vrot.lane.b32.xlu0 %v1699_v41, %s2927_s16 }
 0x675   :  { %1768 = vrot.lane.b32.xlu1 %v1684_v21, %s2927_s16  ;;  %1770 = vrot.lane.b32.xlu0 %v1689_v28, %s2927_s16 }
 0x679   :  { %1764 = vrot.lane.b32.xlu1 %v1674_v36, %s2927_s16  ;;  %1766 = vrot.lane.b32.xlu0 %v1679_v18, %s2927_s16 }
 0x67d   :  { %1236 = vperm.xlu0 %2805, %v4366_v58  }
 0x6d3   :  { %v1787_v0 = vpop.permute.xlu1 %1786 }
 0x6d4   :  { %1814 = vst.msk [vmem:[#allocation2 + $0x59] sm:$0xff] %vm972_vm8, %v1787_v0 }
 0x6d7   :  { %v1785_v3 = vpop.permute.xlu1 %1784  ;;  %v1789_v51 = vpop.permute.xlu0 %1788 }
 0x6d8   :  { %1813 = vst.msk [vmem:[#allocation2 + $0x51] sm:$0xff] %vm972_vm8, %v1785_v3 }
 0x6d9   :  { %1815 = vst.msk [vmem:[#allocation2 + $0x61] sm:$0xf] %vm985_vm9, %v1789_v51 }
 0x6db   :  { %v1781_v62 = vpop.permute.xlu1 %1780  ;;  %v1783_v19 = vpop.permute.xlu0 %1782  ;;  %v1827_v43 = vld [vmem:[#allocation2 + $0x59] sm:$0xff] }
 0x6dc   :  { %1811 = vst.msk [vmem:[#allocation2 + $0x41] sm:$0xff] %vm972_vm8, %v1781_v62  ;;  %1812 = vst.msk [vmem:[#allocation2 + $0x49] sm:$0xff] %vm972_vm8, %v1783_v19  ;;  %v1905_v38 = vmul.f32 0.75, %v1827_v43  ;;  %v3975_v8 = vmul.f32 0.25, %v1827_v43 }
 0x6df   :  { %v1777_v9 = vpop.permute.xlu1 %1776  ;;  %v1779_v13 = vpop.permute.xlu0 %1778  ;;  %v1840_v44 = vld [vmem:[#allocation2 + $0x58] sm:$0xff] }
 0x6e0   :  { %v1828_v4 = vld [vmem:[#allocation2 + $0x61] sm:$0xf]  ;;  %1809 = vst.msk [vmem:[#allocation2 + $0x31] sm:$0xff] %vm972_vm8, %v1777_v9  ;;  %1810 = vst.msk [vmem:[#allocation2 + $0x39] sm:$0xff] %vm972_vm8, %v1779_v13  ;;  %v1892_v6 = vmul.f32 0.25, %v1840_v44  ;;  %v1957_v18 = vmul.f32 0.75, %v1840_v44 }
 0x6e1   :  { %v1841_v54 = vld [vmem:[#allocation2 + $0x60] sm:$0xf]  ;;  %v1906_v39 = vmul.f32 0.75, %v1828_v4  ;;  %v3957_v48 = vmul.f32 0.25, %v1828_v4  ;;  %v1826_v21 = vld [vmem:[#allocation2 + $0x51] sm:$0xff] }
 0x6e2   :  { %v3953_v37 = vld [vmem:[#allocation2 + $0x62] sm:$0xf]  ;;  %v1893_v35 = vmul.f32 0.25, %v1841_v54  ;;  %v1958_v61 = vmul.f32 0.75, %v1841_v54  ;;  %v3959_v57 = vld [vmem:[#allocation2 + $0x5a] sm:$0xff]  ;;  %v3973_v28 = vadd.f32 %v1905_v38, %v1892_v6  ;;  %v3977_v50 = vld [vmem:[#allocation2 + $0x52] sm:$0xff]  ;;  %v1983_v53 = vadd.f32 %v3975_v8, %v1957_v18 }
 0x6e3   :  { %v1880_v23 = vsel %vm1064_vm10, %v1828_v4, %v3953_v37  ;;  %v1773_v36 = vpop.permute.xlu1 %1772  ;;  %v1775_v14 = vpop.permute.xlu0 %1774  ;;  %v1931_v7 = vmul.f32 0.25, %v3959_v57  ;;  %v1839_v22 = vld [vmem:[#allocation2 + $0x50] sm:$0xff]  ;;  %v1838_v42 = vld [vmem:[#allocation2 + $0x48] sm:$0xff]  ;;  %v1904_v63 = vmul.f32 0.75, %v1826_v21  ;;  %v1930_v45 = vmul.f32 0.25, %v3977_v50 }
 0x6e4   :  { %v3964_v29 = vadd.f32 %v1906_v39, %v1893_v35  ;;  %v1984_v11 = vadd.f32 %v3957_v48, %v1958_v61  ;;  %v1932_v33 = vmul.f32 0.25, %v1880_v23  ;;  %1807 = vst.msk [vmem:[#allocation2 + $0x21] sm:$0xff] %vm972_vm8, %v1773_v36  ;;  %1808 = vst.msk [vmem:[#allocation2 + $0x29] sm:$0xff] %vm972_vm8, %v1775_v14  ;;  %v1891_v32 = vmul.f32 0.25, %v1839_v22  ;;  %v1825_v41 = vld [vmem:[#allocation2 + $0x49] sm:$0xff]  ;;  %v1824_v51 = vld [vmem:[#allocation2 + $0x41] sm:$0xff] }
 0x6e5   :  { %v3983_v49 = vadd.f32 %v1931_v7, %v1905_v38  ;;  %v1956_v30 = vmul.f32 0.75, %v1839_v22  ;;  %v1890_v47 = vmul.f32 0.25, %v1838_v42  ;;  %v1903_v52 = vmul.f32 0.75, %v1825_v41  ;;  %v3990_v59 = vld [vmem:[#allocation2 + $0x4a] sm:$0xff]  ;;  %v4007_v9 = vld [vmem:[#allocation2 + $0x42] sm:$0xff] }
 0x6e6   :  { %2043 = vmatprep.subr.mxu0 %v3964_v29  ;;  %v3971_v12 = vadd.f32 %v1932_v33, %v1906_v39  ;;  %v3987_v55 = vadd.f32 %v1904_v63, %v1891_v32  ;;  %v3992_v56 = vmul.f32 0.25, %v1826_v21  ;;  %v1955_v40 = vmul.f32 0.75, %v1838_v42 }
 0x6e7   :  { %2044 = vmatpush1.xpose.msra.mxu0 %v1984_v11  ;;  %v1769_v46 = vpop.permute.xlu1 %1768  ;;  %v1771_v27 = vpop.permute.xlu0 %1770  ;;  %v1837_v17 = vld [vmem:[#allocation2 + $0x40] sm:$0xff]  ;;  %v3998_v0 = vmul.f32 0.25, %v1825_v41  ;;  %v1929_v3 = vmul.f32 0.25, %v3990_v59  ;;  %v4003_v62 = vadd.f32 %v1930_v45, %v1904_v63  ;;  %v4005_v19 = vadd.f32 %v1903_v52, %v1890_v47  ;;  %v1836_v4 = vld [vmem:[#allocation2 + $0x38] sm:$0xff] }
 0x6e8   :  { %2700 = vmatpush3.xpose.msra.mxu1 %v3971_v12  ;;  %2045 = vmatprep.subr.mxu0 %v3973_v28  ;;  %1805 = vst.msk [vmem:[#allocation2 + $0x11] sm:$0xff] %vm972_vm8, %v1769_v46  ;;  %1806 = vst.msk [vmem:[#allocation2 + $0x19] sm:$0xff] %vm972_vm8, %v1771_v27  ;;  %v1982_v58 = vadd.f32 %v3992_v56, %v1956_v30  ;;  %v1889_v43 = vmul.f32 0.25, %v1837_v17  ;;  %v1823_v13 = vld [vmem:[#allocation2 + $0x39] sm:$0xff]  ;;  %v1902_v54 = vmul.f32 0.75, %v1824_v51  ;;  %v1954_v61 = vmul.f32 0.75, %v1837_v17 }
 0x6e9   :  { %2701 = vmatprep.subr.mxu1 %v4321_v16  ;;  %v1981_v35 = vadd.f32 %v3998_v0, %v1955_v40  ;;  %v4013_v39 = vadd.f32 %v1929_v3, %v1903_v52  ;;  %v1928_v23 = vmul.f32 0.25, %v4007_v9  ;;  %v1888_v6 = vmul.f32 0.25, %v1836_v4  ;;  %v4018_v33 = vld [vmem:[#allocation2 + $0x3a] sm:$0xff]  ;;  %v1822_v22 = vld [vmem:[#allocation2 + $0x31] sm:$0xff] }
 0x6ea   :  { %v4015_v44 = vadd.f32 %v1902_v54, %v1889_v43  ;;  %v1901_v11 = vmul.f32 0.75, %v1823_v13  ;;  %v4020_v38 = vmul.f32 0.25, %v1824_v51  ;;  %v1953_v18 = vmul.f32 0.75, %v1836_v4  ;;  %v4033_v63 = vld [vmem:[#allocation2 + $0x32] sm:$0xff] }
 0x6eb   :  { %2046 = vmatpush1.xpose.msra.mxu0 %v1983_v53  ;;  %v1765_v15 = vpop.permute.xlu1 %1764  ;;  %v1767_v34 = vpop.permute.xlu0 %1766  ;;  %v1835_v36 = vld [vmem:[#allocation2 + $0x30] sm:$0xff]  ;;  %v4026_v7 = vmul.f32 0.25, %v1823_v13  ;;  %v1927_v21 = vmul.f32 0.25, %v4018_v33  ;;  %v4029_v32 = vadd.f32 %v1928_v23, %v1902_v54  ;;  %v1834_v27 = vld [vmem:[#allocation2 + $0x28] sm:$0xff]  ;;  %v1900_v53 = vmul.f32 0.75, %v1822_v22 }
 0x6ec   :  { %2702 = vmatpush3.xpose.msra.mxu1 %v3983_v49  ;;  %2047 = vmatprep.subr.mxu0 %v3987_v55  ;;  %1803 = vst.msk [vmem:[#allocation2 + $0x1] sm:$0xff] %vm972_vm8, %v1765_v15  ;;  %1804 = vst.msk [vmem:[#allocation2 + $0x9] sm:$0xff] %vm972_vm8, %v1767_v34  ;;  %v1980_v14 = vadd.f32 %v4020_v38, %v1954_v61  ;;  %v4031_v41 = vadd.f32 %v1901_v11, %v1888_v6  ;;  %v1887_v42 = vmul.f32 0.25, %v1835_v36  ;;  %v1821_v46 = vld [vmem:[#allocation2 + $0x29] sm:$0xff]  ;;  %v1820_v23 = vld [vmem:[#allocation2 + $0x21] sm:$0xff] }
 0x6ed   :  { %2703 = vmatprep.subr.mxu1 %v4321_v16  ;;  %v1979_v30 = vadd.f32 %v4026_v7, %v1953_v18  ;;  %v4039_v45 = vadd.f32 %v1927_v21, %v1901_v11  ;;  %v1952_v47 = vmul.f32 0.75, %v1835_v36  ;;  %v1926_v15 = vmul.f32 0.25, %v4033_v63  ;;  %v4046_v40 = vld [vmem:[#allocation2 + $0x2a] sm:$0xff] }
 0x6ee   :  { %v4043_v17 = vadd.f32 %v1900_v53, %v1887_v42  ;;  %v1886_v34 = vmul.f32 0.25, %v1834_v27  ;;  %v4052_v43 = vmul.f32 0.25, %v1822_v22  ;;  %v1951_v4 = vmul.f32 0.75, %v1834_v27 }
 0x6ef   :  { %2048 = vmatpush1.xpose.msra.mxu0 %v1982_v58  ;;  %v1899_v58 = vmul.f32 0.75, %v1821_v46  ;;  %v1833_v13 = vld [vmem:[#allocation2 + $0x20] sm:$0xff]  ;;  %v4056_v54 = vmul.f32 0.25, %v1821_v46  ;;  %v4063_v6 = vadd.f32 %v1926_v15, %v1900_v53  ;;  %v1898_v18 = vmul.f32 0.75, %v1820_v23 }
 0x6f0   :  { %2704 = vmatpush3.xpose.msra.mxu1 %v4003_v62  ;;  %2049 = vmatprep.subr.mxu0 %v4005_v19  ;;  %v1885_v36 = vmul.f32 0.25, %v1833_v13  ;;  %v1950_v42 = vmul.f32 0.75, %v1833_v13  ;;  %v4088_v15 = vmul.f32 0.25, %v1820_v23 }
 0x6f1   :  { %2705 = vmatprep.subr.mxu1 %v4321_v16  ;;  %v4065_v11 = vadd.f32 %v1899_v58, %v1886_v34  ;;  %v1977_v21 = vadd.f32 %v4056_v54, %v1951_v4  ;;  %v1818_v4 = vld [vmem:[#allocation2 + $0x11] sm:$0xff] }
 0x6f2   :  { %v4083_v46 = vadd.f32 %v1898_v18, %v1885_v36  ;;  %4370 = vst [vmem:[#allocation29_spill] sm:$0xff] %v4088_v15 }
 0x6f3   :  { %2050 = vmatpush1.xpose.msra.mxu0 %v1981_v35  ;;  %v1831_v34 = vld [vmem:[#allocation2 + $0x10] sm:$0xff]  ;;  %v1830_v36 = vld [vmem:[#allocation2 + $0x8] sm:$0xff] }
 0x6f4   :  { %2706 = vmatpush3.xpose.msra.mxu1 %v4013_v39  ;;  %2051 = vmatprep.subr.mxu0 %v4015_v44  ;;  %4368 = vst [vmem:[#allocation35_spill] sm:$0xff] %v4083_v46  ;;  %v1817_v23 = vld [vmem:[#allocation2 + $0x9] sm:$0xff] }
 0x6f5   :  { %2707 = vmatprep.subr.mxu1 %v4321_v16 }
 0x6f7   :  { %2052 = vmatpush1.xpose.msra.mxu0 %v1980_v14  ;;  %v1832_v14 = vld [vmem:[#allocation2 + $0x18] sm:$0xff] }
 0x6f8   :  { %2708 = vmatpush3.xpose.msra.mxu1 %v4029_v32  ;;  %2053 = vmatprep.subr.mxu0 %v4031_v41  ;;  %v4041_v52 = vpop.permute.xlu0 %1236  ;;  %v1884_v53 = vmul.f32 0.25, %v1832_v14 }
 0x6f9   :  { %2709 = vmatprep.subr.mxu1 %v4321_v16  ;;  %4367 = vst [vmem:[#allocation34_spill] sm:$0xff] %v4041_v52  ;;  %v1326_v3 = vadd.f32 %v3926_v60, %v4041_v52  ;;  %v1468_v51 = vadd.f32 %v3928_v24, %v4041_v52  ;;  %v1978_v60 = vadd.f32 %v4052_v43, %v1952_v47  ;;  %v1925_v24 = vmul.f32 0.25, %v4046_v40  ;;  %v4086_v47 = vld [vmem:[#allocation2 + $0x1a] sm:$0xff] }
 0x6fa   :  { %4369 = vst [vmem:[#allocation36_spill] sm:$0xff] %v4086_v47  ;;  %v1923_v13 = vmul.f32 0.25, %v4086_v47  ;;  %v1882_v52 = vmul.f32 0.25, %v1830_v36  ;;  %v4112_v47 = vld [vmem:[#allocation2 + $0xa] sm:$0xff] }
 0x6fb   :  { %2054 = vmatpush1.xpose.msra.mxu0 %v1979_v30  ;;  %v1396_v35 = vadd.f32 %v3941_v26, %v1326_v3  ;;  %v1538_v61 = vadd.f32 %v3946_v20, %v1468_v51  ;;  %v4075_v26 = vld [vmem:[#allocation2 + $0x22] sm:$0xff]  ;;  %v1819_v20 = vld [vmem:[#allocation2 + $0x19] sm:$0xff]  ;;  %v4081_v22 = vadd.f32 %v1925_v24, %v1899_v58  ;;  %v1976_v58 = vadd.f32 %v4088_v15, %v1950_v42 }
 0x6fc   :  { %2710 = vmatpush3.xpose.msra.mxu1 %v4039_v45  ;;  %2055 = vmatprep.subr.mxu0 %v4043_v17  ;;  %v1924_v27 = vmul.f32 0.25, %v4075_v26  ;;  %v1897_v30 = vmul.f32 0.75, %v1819_v20  ;;  %v1949_v3 = vmul.f32 0.75, %v1832_v14  ;;  %v4094_v51 = vmul.f32 0.25, %v1819_v20  ;;  %v4101_v24 = vld [vmem:[#allocation2 + $0x12] sm:$0xff]  ;;  %v1816_v20 = vld [vmem:[#allocation2 + $0x1] sm:$0xff] }
 0x6fd   :  { %2711 = vmatprep.subr.mxu1 %v4321_v16  ;;  %1400 = vst.msk [vmem:[%s4243_s8] sm:$0x3] %vm1399_vm4, %v1396_v35  ;;  %1541 = vst.msk [vmem:[%s4244_s9] sm:$0x3] %vm1399_vm4, %v1538_v61  ;;  %v1896_v14 = vmul.f32 0.75, %v1818_v4  ;;  %v1894_v10 = vmul.f32 0.75, %v1816_v20 }
 0x6fe   :  { %v4097_v35 = vadd.f32 %v1924_v27, %v1898_v18  ;;  %v4099_v61 = vadd.f32 %v1897_v30, %v1884_v53  ;;  %4372 = vst [vmem:[#allocation31_spill] sm:$0xff] %v4101_v24  ;;  %v1975_v18 = vadd.f32 %v4094_v51, %v1949_v3  ;;  %v4107_v42 = vadd.f32 %v1923_v13, %v1897_v30 }
 0x6ff   :  { %2056 = vmatpush1.xpose.msra.mxu0 %v1978_v60  ;;  %v1883_v60 = vmul.f32 0.25, %v1831_v34  ;;  %v1948_v27 = vmul.f32 0.75, %v1831_v34  ;;  %v1947_v34 = vmul.f32 0.75, %v1830_v36  ;;  %v4122_v3 = vmul.f32 0.25, %v1817_v23 }
 0x700   :  { %2712 = vmatpush3.xpose.msra.mxu1 %v4063_v6  ;;  %2057 = vmatprep.subr.mxu0 %v4065_v11  ;;  %4371 = vst [vmem:[#allocation30_spill] sm:$0xff] %v4099_v61  ;;  %v1921_v13 = vmul.f32 0.25, %v4112_v47 }
 0x701   :  { %2713 = vmatprep.subr.mxu1 %v4321_v16  ;;  %v4109_v53 = vadd.f32 %v1896_v14, %v1883_v60 }
 0x703   :  { %2058 = vmatpush1.xpose.msra.mxu0 %v1977_v21  ;;  %v1829_v21 = vld [vmem:[#allocation2] sm:$0xff] }
 0x704   :  { %2714 = vmatpush3.xpose.msra.mxu1 %v4081_v22  ;;  %2059 = vmatprep.subr.mxu0 %v4083_v46  ;;  %v1895_v46 = vmul.f32 0.75, %v1817_v23  ;;  %v1855_v15 = vsel %vm1026_vm2, %v1816_v20, %v1829_v21  ;;  %v1973_v23 = vadd.f32 %v4122_v3, %v1947_v34  ;;  %v1946_v36 = vmul.f32 0.75, %v1829_v21 }
 0x705   :  { %2715 = vmatprep.subr.mxu1 %v4321_v16 }
 0x707   :  { %2060 = vmatpush1.xpose.msra.mxu0 %v1976_v58  ;;  %v1922_v58 = vmul.f32 0.25, %v4101_v24  ;;  %v4129_v24 = vld [vmem:[#allocation2 + $0x2] sm:$0xff] }
 0x708   :  { %2716 = vmatpush3.xpose.msra.mxu1 %v4097_v35  ;;  %2061 = vmatprep.subr.mxu0 %v4099_v61  ;;  %v4114_v61 = vmul.f32 0.25, %v1818_v4  ;;  %v4127_v4 = vadd.f32 %v1895_v46, %v1882_v52 }
 0x709   :  { %2717 = vmatprep.subr.mxu1 %v4321_v16  ;;  %v4125_v60 = vadd.f32 %v1922_v58, %v1896_v14  ;;  %v4137_v14 = vadd.f32 %v1921_v13, %v1895_v46 }
 0x70a   :  { %v1974_v30 = vadd.f32 %v4114_v61, %v1948_v27  ;;  %v4135_v27 = vmul.f32 0.25, %v1816_v20  ;;  %v2009_v20 = vmul.f32 0.75, %v3959_v57  ;;  %v2006_v57 = vmul.f32 0.75, %v4007_v9  ;;  %v4375_v9 = vld [vmem:[#allocation35_spill] sm:$0xff] }
 0x70b   :  { %2062 = vmatpush1.xpose.msra.mxu0 %v1975_v18  ;;  %v1881_v18 = vmul.f32 0.25, %v1855_v15  ;;  %v1920_v15 = vmul.f32 0.25, %v4129_v24 }
 0x70c   :  { %2718 = vmatpush3.xpose.msra.mxu1 %v4107_v42  ;;  %2063 = vmatprep.subr.mxu0 %v4109_v53  ;;  %v1972_v58 = vadd.f32 %v4135_v27, %v1946_v36  ;;  %v2022_v25 = vadd.f32 %v2009_v20, %v3975_v8  ;;  %v2004_v8 = vmul.f32 0.75, %v4033_v63  ;;  %v1998_v63 = vmul.f32 0.75, %v4129_v24 }
 0x70d   :  { %2719 = vmatprep.subr.mxu1 %v4321_v16  ;;  %v4139_v52 = vadd.f32 %v1894_v10, %v1881_v18  ;;  %v4147_v21 = vadd.f32 %v1920_v15, %v1894_v10 }
 0x70f   :  { %2064 = vmatpush1.xpose.msra.mxu0 %v1974_v30  ;;  %v2010_v30 = vmul.f32 0.75, %v3953_v37  ;;  %v2008_v37 = vmul.f32 0.75, %v3977_v50  ;;  %v2017_v50 = vadd.f32 %v2004_v8, %v4052_v43 }
 0x710   :  { %2720 = vmatpush3.xpose.msra.mxu1 %v4125_v60  ;;  %2065 = vmatprep.subr.mxu0 %v4127_v4 }
 0x711   :  { %2721 = vmatprep.subr.mxu1 %v4321_v16  ;;  %v2023_v46 = vadd.f32 %v2010_v30, %v3957_v48  ;;  %v2021_v31 = vadd.f32 %v2008_v37, %v3992_v56  ;;  %v2007_v48 = vmul.f32 0.75, %v3990_v59  ;;  %v2002_v59 = vmul.f32 0.75, %v4075_v26  ;;  %v4373_v56 = vld [vmem:[#allocation29_spill] sm:$0xff] }
 0x713   :  { %2066 = vmatpush1.xpose.msra.mxu0 %v1973_v23 }
 0x714   :  { %2722 = vmatpush3.xpose.msra.mxu1 %v4137_v14  ;;  %2067 = vmatprep.subr.mxu0 %v4139_v52 }
 0x715   :  { %2723 = vmatprep.subr.mxu1 %v4321_v16 }
 0x717   :  { %2382 = vmatpush1.xpose.msk.msra.mxu0 %vm3762_vm3, %v1972_v58 }
 0x718   :  { %2724 = vmatpush3.xpose.msra.mxu1 %v4147_v21  ;;  %2185 = vmatprep.subr.mxu0 %v3971_v12  ;;  %v2005_v12 = vmul.f32 0.75, %v4018_v33 }
 0x719   :  { %2728 = vmatprep.subr.mxu1 %v4321_v16 }
 0x71a   :  { %2102 = vmatmul.mubr.f32.vlgmr.msra.gmra.mxu0 %v3491_v1 }
 0x71b   :  { %2726 = vmatmul.mubr.f32.vlgmr.msra.gmra.mxu1 %v3774_v5  ;;  %2186 = vmatpush1.xpose.msra.mxu0 %v3964_v29  ;;  %v2019_v29 = vadd.f32 %v2006_v57, %v4020_v38  ;;  %v4377_v38 = vld [vmem:[#allocation30_spill] sm:$0xff] }
 0x71c   :  { %2729 = vmatpush3.xpose.msk.msra.mxu1 %vm3781_vm11, %v2023_v46  ;;  %2187 = vmatprep.subr.mxu0 %v3983_v49  ;;  %v2003_v49 = vmul.f32 0.75, %v4046_v40  ;;  %v4378_v40 = vld [vmem:[#allocation34_spill] sm:$0xff] }
 0x71d   :  { %2730 = vmatprep.subr.mxu1 %v4321_v16  ;;  %2243 = vmatprep.mubr.f32.mxu0 %v3495_v2  ;;  %v2020_v2 = vadd.f32 %v2007_v48, %v3998_v0  ;;  %v2015_v0 = vadd.f32 %v2002_v59, %v4373_v56 }
 0x71e   :  { %2754 = vmatprep.mubr.msk.f32.mxu1 %vm2925_vm0, %v4321_v16 }
 0x71f   :  { %2188 = vmatpush1.xpose.msra.mxu0 %v3973_v28  ;;  %v2018_v28 = vadd.f32 %v2005_v12, %v4026_v7 }
 0x720   :  { %2731 = vmatpush3.xpose.msra.mxu1 %v2022_v25  ;;  %2189 = vmatprep.subr.mxu0 %v4003_v62  ;;  %v4374_v62 = vld [vmem:[#allocation36_spill] sm:$0xff] }
 0x721   :  { %2732 = vmatprep.subr.mxu1 %v4321_v16 }
 0x723   :  { %2190 = vmatpush1.xpose.msra.mxu0 %v3987_v55  ;;  %v2016_v55 = vadd.f32 %v2003_v49, %v4056_v54 }
 0x724   :  { %2733 = vmatpush3.xpose.msra.mxu1 %v2021_v31  ;;  %2191 = vmatprep.subr.mxu0 %v4013_v39 }
 0x725   :  { %2734 = vmatprep.subr.mxu1 %v4321_v16 }
 0x727   :  { %2192 = vmatpush1.xpose.msra.mxu0 %v4005_v19  ;;  %v2001_v19 = vmul.f32 0.75, %v4374_v62 }
 0x728   :  { %2735 = vmatpush3.xpose.msra.mxu1 %v2020_v2  ;;  %2193 = vmatprep.subr.mxu0 %v4029_v32  ;;  %v1999_v32 = vmul.f32 0.75, %v4112_v47 }
 0x729   :  { %2736 = vmatprep.subr.mxu1 %v4321_v16  ;;  %v2014_v39 = vadd.f32 %v2001_v19, %v4094_v51 }
 0x72b   :  { %2194 = vmatpush1.xpose.msra.mxu0 %v4015_v44  ;;  %v4376_v44 = vld [vmem:[#allocation31_spill] sm:$0xff] }
 0x72c   :  { %2737 = vmatpush3.xpose.msra.mxu1 %v2019_v29  ;;  %2195 = vmatprep.subr.mxu0 %v4039_v45  ;;  %v2000_v33 = vmul.f32 0.75, %v4376_v44  ;;  %v2011_v45 = vadd.f32 %v1998_v63, %v4135_v27 }
 0x72d   :  { %2738 = vmatprep.subr.mxu1 %v4321_v16 }
 0x72e   :  { %v2013_v7 = vadd.f32 %v2000_v33, %v4114_v61 }
 0x72f   :  { %2196 = vmatpush1.xpose.msra.mxu0 %v4031_v41  ;;  %v2012_v41 = vadd.f32 %v1999_v32, %v4122_v3 }
 0x730   :  { %2739 = vmatpush3.xpose.msra.mxu1 %v2018_v28  ;;  %2197 = vmatprep.subr.mxu0 %v4063_v6 }
 0x731   :  { %2740 = vmatprep.subr.mxu1 %v4321_v16 }
 0x733   :  { %2198 = vmatpush1.xpose.msra.mxu0 %v4043_v17 }
 0x734   :  { %2741 = vmatpush3.xpose.msra.mxu1 %v2017_v50  ;;  %2199 = vmatprep.subr.mxu0 %v4081_v22 }
 0x735   :  { %2742 = vmatprep.subr.mxu1 %v4321_v16 }
 0x737   :  { %2200 = vmatpush1.xpose.msra.mxu0 %v4065_v11 }
 0x738   :  { %2743 = vmatpush3.xpose.msra.mxu1 %v2016_v55  ;;  %2201 = vmatprep.subr.mxu0 %v4097_v35 }
 0x739   :  { %2744 = vmatprep.subr.mxu1 %v4321_v16 }
 0x73b   :  { %2202 = vmatpush1.xpose.msra.mxu0 %v4375_v9 }
 0x73c   :  { %2745 = vmatpush3.xpose.msra.mxu1 %v2015_v0  ;;  %2203 = vmatprep.subr.mxu0 %v4107_v42 }
 0x73d   :  { %2746 = vmatprep.subr.mxu1 %v4321_v16 }
 0x73f   :  { %2204 = vmatpush1.xpose.msra.mxu0 %v4377_v38 }
 0x740   :  { %2747 = vmatpush3.xpose.msra.mxu1 %v2014_v39  ;;  %2205 = vmatprep.subr.mxu0 %v4125_v60 }
 0x741   :  { %2748 = vmatprep.subr.mxu1 %v4321_v16 }
 0x743   :  { %2206 = vmatpush1.xpose.msra.mxu0 %v4109_v53 }
 0x744   :  { %2749 = vmatpush3.xpose.msra.mxu1 %v2013_v7  ;;  %2207 = vmatprep.subr.mxu0 %v4137_v14 }
 0x745   :  { %2750 = vmatprep.subr.mxu1 %v4321_v16 }
 0x747   :  { %2208 = vmatpush1.xpose.msra.mxu0 %v4127_v4 }
 0x748   :  { %2751 = vmatpush3.xpose.msra.mxu1 %v2012_v41  ;;  %2209 = vmatprep.subr.mxu0 %v4147_v21 }
 0x749   :  { %2752 = vmatprep.subr.mxu1 %v4321_v16 }
 0x74b   :  { %2210 = vmatpush1.xpose.msra.mxu0 %v4139_v52 }
 0x74c   :  { %2753 = vmatpush3.xpose.msra.mxu1 %v2011_v45 }
 0x74e   :  { %2244 = vmatmul.mubr.f32.vlgmr.msra.gmra.mxu0 %v3491_v1 }
 0x74f   :  { %2755 = vmatmul.mubr.f32.vlgmr.msra.gmra.mxu1 %v3774_v5 }
 0x7da   :  { %v2103_v17 = vpop.f32.mrf.mxu0 }
 0x7db   :  { %v2104_v43 = vadd.f32 %v2103_v17, %v4378_v40  ;;  %v2173_v54 = vpop.f32.mrf.mxu1 }
 0x7dc   :  { %v2105_v6 = vpop.f32.mrf.mxu0 }
 0x7dd   :  { %v2174_v11 = vadd.f32 %v2173_v54, %v2104_v43  ;;  %v2727_v26 = vpop.f32.mrf.mxu1 }
 0x7df   :  { %2383 = vst.msk [vmem:[%s4243_s8 + $0x2] sm:$0x3] %vm1399_vm4, %v2174_v11 }
 0x80e   :  { %v2245_v16 = vpop.f32.mrf.mxu0 }
 0x80f   :  { %v2246_v22 = vadd.f32 %v2245_v16, %v4378_v40  ;;  %v2315_v47 = vpop.f32.mrf.mxu1 }
 0x810   :  { %v2247_v51 = vpop.f32.mrf.mxu0 }
 0x811   :  { %v2316_v1 = vadd.f32 %v2315_v47, %v2246_v22  ;;  %v2756_v35 = vpop.f32.mrf.mxu1 }
 0x813   :  { %2386 = vst.msk [vmem:[%s4244_s9 + $0x2] sm:$0x3] %vm1399_vm4, %v2316_v1 }
 0x814   :  { %2329 = vsyncpa [#allocation6], 1 }
 0x815   :  { %2330 = vsyncpa [#allocation8], 1 }
 0x816   :  { %2331 = vsyncpa [#allocation11], 1 }

</bundles_post_ra>
